<compile_context>
chip_gen: v7x
topology: tpu7x:2x2x1
jax: 0.10.0
libtpu: 0.0.40
codegen_flags: <defaults>
</compile_context>

<pallas_src>
import functools

import jax
import jax.numpy as jnp
from jax import lax
from jax.experimental import pallas as pl
from jax.experimental.pallas import tpu as pltpu

EPS = 1e-5
LANE = 128
_VMEM_LIMIT = 48 * 1024 * 1024  # sized for v7x's 64 MiB physical VMEM


# ----------------------------------------------------------------------------
# kernels
# ----------------------------------------------------------------------------
def _conv1x1_stats_kernel(x_ref, w_ref, h_ref, st_ref):
    """h = x @ W (bf16 MXU, f32 acc) + per-tile sum / sumsq of h."""
    xb = x_ref[...].astype(jnp.bfloat16)
    h = jnp.dot(xb, w_ref[...], preferred_element_type=jnp.float32)
    h_ref[...] = h.astype(h_ref.dtype)
    s = jnp.sum(h, axis=0, keepdims=True)
    sq = jnp.sum(h * h, axis=0, keepdims=True)
    st_ref[...] = jnp.concatenate([s, sq], axis=0)[None]


def _bn_relu_conv1x1_stats_kernel(h_ref, scale_ref, shift_ref, w_ref,
                                  o_ref, st_ref):
    """o = relu(h*scale + shift) @ W + per-tile sum / sumsq of o."""
    a = jnp.maximum(
        h_ref[...].astype(jnp.float32) * scale_ref[...] + shift_ref[...], 0.0)
    o = jnp.dot(a.astype(jnp.bfloat16), w_ref[...],
                preferred_element_type=jnp.float32)
    o_ref[...] = o.astype(o_ref.dtype)
    s = jnp.sum(o, axis=0, keepdims=True)
    sq = jnp.sum(o * o, axis=0, keepdims=True)
    st_ref[...] = jnp.concatenate([s, sq], axis=0)[None]


def _conv3x3_kernel(hp_ref, scale_ref, shift_ref, w_ref, o_ref, st_ref, *, H, W):
    """Per-image: fused bn1+relu, halo mask, 9 taps -> one MXU matmul."""
    C = w_ref.shape[-1]
    HW = H * W

    hp = hp_ref[...].astype(jnp.float32)                 # (1, H+2, W+2, C)
    sc = scale_ref[...].reshape(1, 1, 1, C)
    sh = shift_ref[...].reshape(1, 1, 1, C)
    a = jnp.maximum(hp * sc + sh, 0.0)

    # Zero the spatial halo once (the padded rows were raw zeros, so bn+relu
    # would otherwise turn them into relu(shift)).  One select per element.
    row = lax.broadcasted_iota(jnp.int32, a.shape, 1)
    col = lax.broadcasted_iota(jnp.int32, a.shape, 2)
    interior = (row >= 1) & (row <= H) & (col >= 1) & (col <= W)
    a = jnp.where(interior, a, 0.0)

    # 9 static slices, concatenated on the lane axis -> single K = 9*C matmul.
    taps = []
    for dh in range(3):
        for dw in range(3):
            taps.append(
                a[:, dh:dh + H, dw:dw + W, :].reshape(HW, C).astype(jnp.bfloat16))
    tap = jnp.concatenate(taps, axis=-1)                 # (HW, 9*C)

    o = jnp.dot(tap, w_ref[...], preferred_element_type=jnp.float32)
    o_ref[...] = o.astype(o_ref.dtype)[None]
    s = jnp.sum(o, axis=0, keepdims=True)
    sq = jnp.sum(o * o, axis=0, keepdims=True)
    st_ref[...] = jnp.concatenate([s, sq], axis=0)[None]


def _bn_add_relu_kernel(h_ref, x_ref, scale_ref, shift_ref, o_ref):
    h = h_ref[...].astype(jnp.float32) * scale_ref[...] + shift_ref[...]
    o_ref[...] = jnp.maximum(h + x_ref[...], 0.0)


# ----------------------------------------------------------------------------
# wrapper glue
# ----------------------------------------------------------------------------
def _pad_to_multiple(n, m):
    return ((n + m - 1) // m) * m


def _pad2d(a, rows, cols):
    out = jnp.zeros((rows, cols), a.dtype)
    return out.at[:a.shape[0], :a.shape[1]].set(a)


def _pick_row_tile(nrows, cap=1024):
    for t in (cap, 512, 256, 128, 64, 32, 16, 8):
        if t <= nrows and nrows % t == 0:
            return t
    return nrows


def _compiler_params():
    return pltpu.CompilerParams(
        dimension_semantics=("parallel",),
        vmem_limit_bytes=_VMEM_LIMIT,
    )


def _finalize_bn(partial, gamma, beta, count):
    """Per-tile (sum, sumsq) -> per-channel scale/shift (O(C) work)."""
    s = jnp.sum(partial[:, 0, :], axis=0, keepdims=True)
    sq = jnp.sum(partial[:, 1, :], axis=0, keepdims=True)
    mean = s / count
    var = jnp.maximum(sq / count - mean * mean, 0.0)
    scale = gamma * lax.rsqrt(var + EPS)
    shift = beta - mean * scale
    return scale.astype(jnp.float32), shift.astype(jnp.float32)


def bottleneck_forward(x_nchw, params):
    N, Cin, H, W = x_nchw.shape
    Cm = params["w1"].shape[1]
    Cout = params["w3"].shape[1]
    # TODO(synk): downsample / stride != 1 branch not implemented; the module
    # default (downsample=None, stride=1) requires inplanes == planes * 4.
    assert Cout == Cin

    f32, bf16 = jnp.float32, jnp.bfloat16
    Cin_p = _pad_to_multiple(Cin, LANE)
    Cm_p = _pad_to_multiple(Cm, LANE)
    Cout_p = _pad_to_multiple(Cout, LANE)
    NHW, HW = N * H * W, H * W
    TR = _pick_row_tile(NHW)
    nt = NHW // TR

    # ---- weights / bn params (lane-padded, matmul operands in bf16) ----
    w1 = _pad2d(params["w1"], Cin_p, Cm_p).astype(bf16)
    w2p = jnp.zeros((9, Cm_p, Cm_p), f32).at[:, :Cm, :Cm].set(params["w2"])
    w2f = w2p.reshape(9 * Cm_p, Cm_p).astype(bf16)       # row = tap*Cm_p + c_in
    w3 = _pad2d(params["w3"], Cm_p, Cout_p).astype(bf16)
    g1 = _pad2d(params["g1"], 1, Cm_p).astype(f32)
    b1 = _pad2d(params["b1"], 1, Cm_p).astype(f32)
    g2 = _pad2d(params["g2"], 1, Cm_p).astype(f32)
    b2 = _pad2d(params["b2"], 1, Cm_p).astype(f32)
    g3 = _pad2d(params["g3"], 1, Cout_p).astype(f32)
    b3 = _pad2d(params["b3"], 1, Cout_p).astype(f32)

    # ---- activations: NCHW -> (NHW, C) channels-last, lane-padded ----
    x2d = _pad2d(jnp.transpose(x_nchw, (0, 2, 3, 1)).reshape(NHW, Cin),
                 NHW, Cin_p)

    row_spec = lambda c: pl.BlockSpec((TR, c), lambda i: (i, 0))
    vec_spec = lambda c: pl.BlockSpec((1, c), lambda i: (0, 0))
    st_spec = lambda c: pl.BlockSpec((1, 2, c), lambda i: (i, 0, 0))

    # ---- K1: conv1 (1x1) + BN1 partial stats ----
    h1, st1 = pl.pallas_call(
        _conv1x1_stats_kernel,
        grid=(nt,),
        in_specs=[row_spec(Cin_p),
                  pl.BlockSpec((Cin_p, Cm_p), lambda i: (0, 0))],
        out_specs=(row_spec(Cm_p), st_spec(Cm_p)),
        out_shape=(jax.ShapeDtypeStruct((NHW, Cm_p), bf16),
                   jax.ShapeDtypeStruct((nt, 2, Cm_p), f32)),
        compiler_params=_compiler_params(),
    )(x2d, w1)
    scale1, shift1 = _finalize_bn(st1, g1, b1, NHW)

    # ---- K2: bn1 + relu + conv2 (3x3) + BN2 partial stats, per image ----
    h1p = jnp.pad(h1.reshape(N, H, W, Cm_p), ((0, 0), (1, 1), (1, 1), (0, 0)))
    h2, st2 = pl.pallas_call(
        functools.partial(_conv3x3_kernel, H=H, W=W),
        grid=(N,),
        in_specs=[pl.BlockSpec((1, H + 2, W + 2, Cm_p), lambda n: (n, 0, 0, 0)),
                  vec_spec(Cm_p), vec_spec(Cm_p),
                  pl.BlockSpec((9 * Cm_p, Cm_p), lambda n: (0, 0))],
        out_specs=(pl.BlockSpec((1, HW, Cm_p), lambda n: (n, 0, 0)),
                   pl.BlockSpec((1, 2, Cm_p), lambda n: (n, 0, 0))),
        out_shape=(jax.ShapeDtypeStruct((N, HW, Cm_p), bf16),
                   jax.ShapeDtypeStruct((N, 2, Cm_p), f32)),
        compiler_params=_compiler_params(),
    )(h1p, scale1, shift1, w2f)
    scale2, shift2 = _finalize_bn(st2, g2, b2, NHW)

    # ---- K3: bn2 + relu + conv3 (1x1) + BN3 partial stats ----
    h3, st3 = pl.pallas_call(
        _bn_relu_conv1x1_stats_kernel,
        grid=(nt,),
        in_specs=[row_spec(Cm_p), vec_spec(Cm_p), vec_spec(Cm_p),
                  pl.BlockSpec((Cm_p, Cout_p), lambda i: (0, 0))],
        out_specs=(row_spec(Cout_p), st_spec(Cout_p)),
        out_shape=(jax.ShapeDtypeStruct((NHW, Cout_p), bf16),
                   jax.ShapeDtypeStruct((nt, 2, Cout_p), f32)),
        compiler_params=_compiler_params(),
    )(h2.reshape(NHW, Cm_p), scale2, shift2, w3)
    scale3, shift3 = _finalize_bn(st3, g3, b3, NHW)

    # ---- K4: bn3 + identity residual + relu ----
    out2d = pl.pallas_call(
        _bn_add_relu_kernel,
        grid=(nt,),
        in_specs=[row_spec(Cout_p), row_spec(Cout_p),
                  vec_spec(Cout_p), vec_spec(Cout_p)],
        out_specs=row_spec(Cout_p),
        out_shape=jax.ShapeDtypeStruct((NHW, Cout_p), f32),
        compiler_params=_compiler_params(),
    )(h3, x2d, scale3, shift3)

    out = out2d[:, :Cout].reshape(N, H, W, Cout)
    return jnp.transpose(out, (0, 3, 1, 2))


# ----------------------------------------------------------------------------
# pure-JAX reference (for correctness checking only)
# ----------------------------------------------------------------------------
def bottleneck_reference(x, params):
    def bn(y, g, b):
        mean = jnp.mean(y, axis=(0, 2, 3), keepdims=True)
        var = jnp.mean((y - mean) ** 2, axis=(0, 2, 3), keepdims=True)
        return ((y - mean) * lax.rsqrt(var + EPS) * g.reshape(1, -1, 1, 1)
                + b.reshape(1, -1, 1, 1))

    dn = ("NCHW", "OIHW", "NCHW")
    Cin = x.shape[1]
    Cm = params["w1"].shape[1]
    Cout = params["w3"].shape[1]
    w1 = params["w1"].T.reshape(Cm, Cin, 1, 1)
    w2 = params["w2"].reshape(3, 3, Cm, Cm).transpose(3, 2, 0, 1)
    w3 = params["w3"].T.reshape(Cout, Cm, 1, 1)

    out = lax.conv_general_dilated(x, w1, (1, 1), "VALID", dimension_numbers=dn)
    out = jnp.maximum(bn(out, params["g1"], params["b1"]), 0.0)
    out = lax.conv_general_dilated(out, w2, (1, 1), ((1, 1), (1, 1)),
                                   dimension_numbers=dn)
    out = jnp.maximum(bn(out, params["g2"], params["b2"]), 0.0)
    out = lax.conv_general_dilated(out, w3, (1, 1), "VALID", dimension_numbers=dn)
    out = bn(out, params["g3"], params["b3"])
    return jnp.maximum(out + x, 0.0)


if __name__ == "__main__":
    key = jax.random.PRNGKey(0)
    N, inplanes, H, W = 2, 32, 8, 8
    planes = 8
    Cout = planes * 4  # expansion = 4 -> 32 == inplanes, identity residual valid

    ks = jax.random.split(key, 10)
    params = {
        # conv1 weight (1x1): (Cin, Cm)        [PyTorch (Cm, Cin, 1, 1)]
        "w1": 0.1 * jax.random.normal(ks[0], (inplanes, planes), jnp.float32),
        "g1": 1.0 + 0.1 * jax.random.normal(ks[1], (1, planes), jnp.float32),
        "b1": 0.1 * jax.random.normal(ks[2], (1, planes), jnp.float32),
        # conv2 weight (3x3): (9, Cin, Cout), tap index = dh*3 + dw
        "w2": 0.1 * jax.random.normal(ks[3], (9, planes, planes), jnp.float32),
        "g2": 1.0 + 0.1 * jax.random.normal(ks[4], (1, planes), jnp.float32),
        "b2": 0.1 * jax.random.normal(ks[5], (1, planes), jnp.float32),
        # conv3 weight (1x1): (Cm, Cout)       [PyTorch (Cout, Cm, 1, 1)]
        "w3": 0.1 * jax.random.normal(ks[6], (planes, Cout), jnp.float32),
        "g3": 1.0 + 0.1 * jax.random.normal(ks[7], (1, Cout), jnp.float32),
        "b3": 0.1 * jax.random.normal(ks[8], (1, Cout), jnp.float32),
    }
    x = jax.random.normal(ks[9], (N, inplanes, H, W), jnp.float32)

    out = jax.block_until_ready(jax.jit(bottleneck_forward)(x, params))
    ref = jax.block_until_ready(bottleneck_reference(x, params))
    assert out.shape == (N, Cout, H, W)

    max_err = float(jnp.max(jnp.abs(out - ref)))
    rel_l2 = float(jnp.linalg.norm(out - ref) / jnp.linalg.norm(ref))
    # bf16 MXU operands (f32 accumulation) -> looser tolerance than pure f32.
    assert jnp.allclose(out, ref, atol=1e-1, rtol=1e-1), (max_err, rel_l2)
    assert rel_l2 < 3e-2, rel_l2
    print("KERNEL_OK")
</pallas_src>

<mosaic_0001>
module attributes {stable_mosaic.version = 11 : i64} {
  func.func @_bn_relu_conv1x1_stats_kernel(%arg0: i32, %arg1: memref<128x128xbf16, #tpu.memory_space<vmem>>, %arg2: memref<1x128xf32, #tpu.memory_space<vmem>>, %arg3: memref<1x128xf32, #tpu.memory_space<vmem>>, %arg4: memref<128x128xbf16, #tpu.memory_space<vmem>>, %arg5: memref<128x128xbf16, #tpu.memory_space<vmem>>, %arg6: memref<1x2x128xf32, #tpu.memory_space<vmem>>) attributes {dimension_semantics = [#tpu.dimension_semantics<parallel>], iteration_bounds = array<i64: 1>, scalar_prefetch = 0 : i64, scratch_operands = 0 : i64, tpu.core_type = #tpu.core_type<tc>, window_params = [{transform_indices = @transform_0, window_bounds = array<i64: 128, 128>}, {pipeline_mode = #tpu.pipeline_mode<synchronous>, transform_indices = @transform_1, window_bounds = array<i64: 1, 128>}, {pipeline_mode = #tpu.pipeline_mode<synchronous>, transform_indices = @transform_2, window_bounds = array<i64: 1, 128>}, {pipeline_mode = #tpu.pipeline_mode<synchronous>, transform_indices = @transform_3, window_bounds = array<i64: 128, 128>}, {transform_indices = @transform_4, window_bounds = array<i64: 128, 128>}, {transform_indices = @transform_5, window_bounds = array<i64: 1, 2, 128>}]} {
    %c0 = arith.constant 0 : index
    %c0_0 = arith.constant 0 : index
    %0 = vector.load %arg1[%c0, %c0_0] : memref<128x128xbf16, #tpu.memory_space<vmem>>, vector<128x128xbf16>
    %1 = arith.extf %0 : vector<128x128xbf16> to vector<128x128xf32>
    %c0_1 = arith.constant 0 : index
    %c0_2 = arith.constant 0 : index
    %2 = vector.load %arg2[%c0_1, %c0_2] : memref<1x128xf32, #tpu.memory_space<vmem>>, vector<1x128xf32>
    %3 = vector.broadcast %2 : vector<1x128xf32> to vector<128x128xf32>
    %4 = arith.mulf %1, %3 : vector<128x128xf32>
    %c0_3 = arith.constant 0 : index
    %c0_4 = arith.constant 0 : index
    %5 = vector.load %arg3[%c0_3, %c0_4] : memref<1x128xf32, #tpu.memory_space<vmem>>, vector<1x128xf32>
    %6 = vector.broadcast %5 : vector<1x128xf32> to vector<128x128xf32>
    %7 = arith.addf %4, %6 : vector<128x128xf32>
    %cst = arith.constant 0.000000e+00 : f32
    %8 = vector.broadcast %cst : f32 to vector<128x128xf32>
    %9 = arith.maximumf %7, %8 : vector<128x128xf32>
    %10 = arith.truncf %9 : vector<128x128xf32> to vector<128x128xbf16>
    %c0_5 = arith.constant 0 : index
    %c0_6 = arith.constant 0 : index
    %11 = vector.load %arg4[%c0_5, %c0_6] : memref<128x128xbf16, #tpu.memory_space<vmem>>, vector<128x128xbf16>
    %cst_7 = arith.constant dense<0.000000e+00> : vector<128x128xf32>
    %12 = tpu.matmul %10, %11, %cst_7 {dimension_numbers = #tpu.dot_dimension_numbers<[1], [0], [0], [1], [0, 0, 1, 1], [], []>} : vector<128x128xbf16>, vector<128x128xbf16>, vector<128x128xf32> -> vector<128x128xf32>
    %13 = arith.truncf %12 : vector<128x128xf32> to vector<128x128xbf16>
    %c0_8 = arith.constant 0 : index
    %c0_9 = arith.constant 0 : index
    %14 = vector.load %arg5[%c0_8, %c0_9] : memref<128x128xbf16, #tpu.memory_space<vmem>>, vector<128x128xbf16>
    tpu.vector_store %arg5[%c0_8, %c0_9], %13 {strides = array<i32>} : memref<128x128xbf16, #tpu.memory_space<vmem>>, vector<128x128xbf16>,
    %cst_10 = arith.constant dense<0.000000e+00> : vector<128xf32>
    %15 = vector.multi_reduction <add>, %12, %cst_10 [0] : vector<128x128xf32> to vector<128xf32>
    %16 = vector.shape_cast %15 : vector<128xf32> to vector<1x128xf32>
    %17 = arith.mulf %12, %12 : vector<128x128xf32>
    %cst_11 = arith.constant dense<0.000000e+00> : vector<128xf32>
    %18 = vector.multi_reduction <add>, %17, %cst_11 [0] : vector<128x128xf32> to vector<128xf32>
    %19 = vector.shape_cast %18 : vector<128xf32> to vector<1x128xf32>
    %20 = tpu.concatenate %16, %19 in 0 : vector<1x128xf32>, vector<1x128xf32> -> vector<2x128xf32>
    %21 = vector.shape_cast %20 : vector<2x128xf32> to vector<1x2x128xf32>
    %c0_12 = arith.constant 0 : index
    %c0_13 = arith.constant 0 : index
    %c0_14 = arith.constant 0 : index
    %22 = vector.load %arg6[%c0_12, %c0_13, %c0_14] : memref<1x2x128xf32, #tpu.memory_space<vmem>>, vector<1x2x128xf32>
    tpu.vector_store %arg6[%c0_12, %c0_13, %c0_14], %21 {strides = array<i32>} : memref<1x2x128xf32, #tpu.memory_space<vmem>>, vector<1x2x128xf32>,
    return
  }
  func.func @transform_0(%arg0: i32) -> (i32, i32) {
    %c0_i32 = arith.constant 0 : i32
    %c0_i32_0 = arith.constant 0 : i32
    return %arg0, %c0_i32 : i32, i32
  }
  func.func @transform_1(%arg0: i32) -> (i32, i32) {
    %c0_i32 = arith.constant 0 : i32
    %c0_i32_0 = arith.constant 0 : i32
    %c0_i32_1 = arith.constant 0 : i32
    return %c0_i32, %c0_i32_0 : i32, i32
  }
  func.func @transform_2(%arg0: i32) -> (i32, i32) {
    %c0_i32 = arith.constant 0 : i32
    %c0_i32_0 = arith.constant 0 : i32
    %c0_i32_1 = arith.constant 0 : i32
    return %c0_i32, %c0_i32_0 : i32, i32
  }
  func.func @transform_3(%arg0: i32) -> (i32, i32) {
    %c0_i32 = arith.constant 0 : i32
    %c0_i32_0 = arith.constant 0 : i32
    %c0_i32_1 = arith.constant 0 : i32
    return %c0_i32, %c0_i32_0 : i32, i32
  }
  func.func @transform_4(%arg0: i32) -> (i32, i32) {
    %c0_i32 = arith.constant 0 : i32
    %c0_i32_0 = arith.constant 0 : i32
    return %arg0, %c0_i32 : i32, i32
  }
  func.func @transform_5(%arg0: i32) -> (i32, i32, i32) {
    %c0_i32 = arith.constant 0 : i32
    %c0_i32_0 = arith.constant 0 : i32
    %c0_i32_1 = arith.constant 0 : i32
    return %arg0, %c0_i32, %c0_i32_0 : i32, i32, i32
  }
}

module attributes {stable_mosaic.version = 11 : i64} {
  func.func @_conv1x1_stats_kernel(%arg0: i32, %arg1: memref<128x128xf32, #tpu.memory_space<vmem>>, %arg2: memref<128x128xbf16, #tpu.memory_space<vmem>>, %arg3: memref<128x128xbf16, #tpu.memory_space<vmem>>, %arg4: memref<1x2x128xf32, #tpu.memory_space<vmem>>) attributes {dimension_semantics = [#tpu.dimension_semantics<parallel>], iteration_bounds = array<i64: 1>, scalar_prefetch = 0 : i64, scratch_operands = 0 : i64, tpu.core_type = #tpu.core_type<tc>, window_params = [{transform_indices = @transform_0, window_bounds = array<i64: 128, 128>}, {pipeline_mode = #tpu.pipeline_mode<synchronous>, transform_indices = @transform_1, window_bounds = array<i64: 128, 128>}, {transform_indices = @transform_2, window_bounds = array<i64: 128, 128>}, {transform_indices = @transform_3, window_bounds = array<i64: 1, 2, 128>}]} {
    %c0 = arith.constant 0 : index
    %c0_0 = arith.constant 0 : index
    %0 = vector.load %arg1[%c0, %c0_0] : memref<128x128xf32, #tpu.memory_space<vmem>>, vector<128x128xf32>
    %1 = arith.truncf %0 : vector<128x128xf32> to vector<128x128xbf16>
    %c0_1 = arith.constant 0 : index
    %c0_2 = arith.constant 0 : index
    %2 = vector.load %arg2[%c0_1, %c0_2] : memref<128x128xbf16, #tpu.memory_space<vmem>>, vector<128x128xbf16>
    %cst = arith.constant dense<0.000000e+00> : vector<128x128xf32>
    %3 = tpu.matmul %1, %2, %cst {dimension_numbers = #tpu.dot_dimension_numbers<[1], [0], [0], [1], [0, 0, 1, 1], [], []>} : vector<128x128xbf16>, vector<128x128xbf16>, vector<128x128xf32> -> vector<128x128xf32>
    %4 = arith.truncf %3 : vector<128x128xf32> to vector<128x128xbf16>
    %c0_3 = arith.constant 0 : index
    %c0_4 = arith.constant 0 : index
    %5 = vector.load %arg3[%c0_3, %c0_4] : memref<128x128xbf16, #tpu.memory_space<vmem>>, vector<128x128xbf16>
    tpu.vector_store %arg3[%c0_3, %c0_4], %4 {strides = array<i32>} : memref<128x128xbf16, #tpu.memory_space<vmem>>, vector<128x128xbf16>,
    %cst_5 = arith.constant dense<0.000000e+00> : vector<128xf32>
    %6 = vector.multi_reduction <add>, %3, %cst_5 [0] : vector<128x128xf32> to vector<128xf32>
    %7 = vector.shape_cast %6 : vector<128xf32> to vector<1x128xf32>
    %8 = arith.mulf %3, %3 : vector<128x128xf32>
    %cst_6 = arith.constant dense<0.000000e+00> : vector<128xf32>
    %9 = vector.multi_reduction <add>, %8, %cst_6 [0] : vector<128x128xf32> to vector<128xf32>
    %10 = vector.shape_cast %9 : vector<128xf32> to vector<1x128xf32>
    %11 = tpu.concatenate %7, %10 in 0 : vector<1x128xf32>, vector<1x128xf32> -> vector<2x128xf32>
    %12 = vector.shape_cast %11 : vector<2x128xf32> to vector<1x2x128xf32>
    %c0_7 = arith.constant 0 : index
    %c0_8 = arith.constant 0 : index
    %c0_9 = arith.constant 0 : index
    %13 = vector.load %arg4[%c0_7, %c0_8, %c0_9] : memref<1x2x128xf32, #tpu.memory_space<vmem>>, vector<1x2x128xf32>
    tpu.vector_store %arg4[%c0_7, %c0_8, %c0_9], %12 {strides = array<i32>} : memref<1x2x128xf32, #tpu.memory_space<vmem>>, vector<1x2x128xf32>,
    return
  }
  func.func @transform_0(%arg0: i32) -> (i32, i32) {
    %c0_i32 = arith.constant 0 : i32
    %c0_i32_0 = arith.constant 0 : i32
    return %arg0, %c0_i32 : i32, i32
  }
  func.func @transform_1(%arg0: i32) -> (i32, i32) {
    %c0_i32 = arith.constant 0 : i32
    %c0_i32_0 = arith.constant 0 : i32
    %c0_i32_1 = arith.constant 0 : i32
    return %c0_i32, %c0_i32_0 : i32, i32
  }
  func.func @transform_2(%arg0: i32) -> (i32, i32) {
    %c0_i32 = arith.constant 0 : i32
    %c0_i32_0 = arith.constant 0 : i32
    return %arg0, %c0_i32 : i32, i32
  }
  func.func @transform_3(%arg0: i32) -> (i32, i32, i32) {
    %c0_i32 = arith.constant 0 : i32
    %c0_i32_0 = arith.constant 0 : i32
    %c0_i32_1 = arith.constant 0 : i32
    return %arg0, %c0_i32, %c0_i32_0 : i32, i32, i32
  }
}

module attributes {stable_mosaic.version = 11 : i64} {
  func.func @_conv3x3_kernel(%arg0: i32, %arg1: memref<1x10x10x128xbf16, #tpu.memory_space<vmem>>, %arg2: memref<1x128xf32, #tpu.memory_space<vmem>>, %arg3: memref<1x128xf32, #tpu.memory_space<vmem>>, %arg4: memref<1152x128xbf16, #tpu.memory_space<vmem>>, %arg5: memref<1x64x128xbf16, #tpu.memory_space<vmem>>, %arg6: memref<1x2x128xf32, #tpu.memory_space<vmem>>) attributes {dimension_semantics = [#tpu.dimension_semantics<parallel>], iteration_bounds = array<i64: 2>, scalar_prefetch = 0 : i64, scratch_operands = 0 : i64, tpu.core_type = #tpu.core_type<tc>, window_params = [{transform_indices = @transform_0, window_bounds = array<i64: 1, 10, 10, 128>}, {pipeline_mode = #tpu.pipeline_mode<synchronous>, transform_indices = @transform_1, window_bounds = array<i64: 1, 128>}, {pipeline_mode = #tpu.pipeline_mode<synchronous>, transform_indices = @transform_2, window_bounds = array<i64: 1, 128>}, {pipeline_mode = #tpu.pipeline_mode<synchronous>, transform_indices = @transform_3, window_bounds = array<i64: 1152, 128>}, {transform_indices = @transform_4, window_bounds = array<i64: 1, 64, 128>}, {transform_indices = @transform_5, window_bounds = array<i64: 1, 2, 128>}]} {
    %c0 = arith.constant 0 : index
    %c0_0 = arith.constant 0 : index
    %c0_1 = arith.constant 0 : index
    %c0_2 = arith.constant 0 : index
    %0 = vector.load %arg1[%c0, %c0_0, %c0_1, %c0_2] : memref<1x10x10x128xbf16, #tpu.memory_space<vmem>>, vector<1x10x10x128xbf16>
    %1 = arith.extf %0 : vector<1x10x10x128xbf16> to vector<1x10x10x128xf32>
    %c0_3 = arith.constant 0 : index
    %c0_4 = arith.constant 0 : index
    %2 = vector.load %arg2[%c0_3, %c0_4] : memref<1x128xf32, #tpu.memory_space<vmem>>, vector<1x128xf32>
    %3 = vector.shape_cast %2 : vector<1x128xf32> to vector<1x1x1x128xf32>
    %c0_5 = arith.constant 0 : index
    %c0_6 = arith.constant 0 : index
    %4 = vector.load %arg3[%c0_5, %c0_6] : memref<1x128xf32, #tpu.memory_space<vmem>>, vector<1x128xf32>
    %5 = vector.shape_cast %4 : vector<1x128xf32> to vector<1x1x1x128xf32>
    %6 = vector.broadcast %3 : vector<1x1x1x128xf32> to vector<1x10x10x128xf32>
    %7 = arith.mulf %1, %6 : vector<1x10x10x128xf32>
    %8 = vector.broadcast %5 : vector<1x1x1x128xf32> to vector<1x10x10x128xf32>
    %9 = arith.addf %7, %8 : vector<1x10x10x128xf32>
    %cst = arith.constant 0.000000e+00 : f32
    %10 = vector.broadcast %cst : f32 to vector<1x10x10x128xf32>
    %11 = arith.maximumf %9, %10 : vector<1x10x10x128xf32>
    %12 = tpu.iota {dimensions = array<i32: 1>} : vector<1x10x10x128xi32>
    %13 = tpu.iota {dimensions = array<i32: 2>} : vector<1x10x10x128xi32>
    %c1_i32 = arith.constant 1 : i32
    %14 = vector.broadcast %c1_i32 : i32 to vector<1x10x10x128xi32>
    %15 = arith.cmpi sge, %12, %14 : vector<1x10x10x128xi32>
    %c8_i32 = arith.constant 8 : i32
    %16 = vector.broadcast %c8_i32 : i32 to vector<1x10x10x128xi32>
    %17 = arith.cmpi sle, %12, %16 : vector<1x10x10x128xi32>
    %18 = arith.andi %15, %17 : vector<1x10x10x128xi1>
    %c1_i32_7 = arith.constant 1 : i32
    %19 = vector.broadcast %c1_i32_7 : i32 to vector<1x10x10x128xi32>
    %20 = arith.cmpi sge, %13, %19 : vector<1x10x10x128xi32>
    %21 = arith.andi %18, %20 : vector<1x10x10x128xi1>
    %c8_i32_8 = arith.constant 8 : i32
    %22 = vector.broadcast %c8_i32_8 : i32 to vector<1x10x10x128xi32>
    %23 = arith.cmpi sle, %13, %22 : vector<1x10x10x128xi32>
    %24 = arith.andi %21, %23 : vector<1x10x10x128xi1>
    %cst_9 = arith.constant 0.000000e+00 : f32
    %25 = vector.broadcast %cst_9 : f32 to vector<1x10x10x128xf32>
    %26 = arith.select %24, %11, %25 : vector<1x10x10x128xi1>, vector<1x10x10x128xf32>
    %27 = vector.extract_strided_slice %26 {offsets = [0, 0, 0, 0], sizes = [1, 8, 8, 128], strides = [1, 1, 1, 1]} : vector<1x10x10x128xf32> to vector<1x8x8x128xf32>
    %28 = vector.shape_cast %27 : vector<1x8x8x128xf32> to vector<64x128xf32>
    %29 = arith.truncf %28 : vector<64x128xf32> to vector<64x128xbf16>
    %30 = vector.extract_strided_slice %26 {offsets = [0, 0, 1, 0], sizes = [1, 8, 8, 128], strides = [1, 1, 1, 1]} : vector<1x10x10x128xf32> to vector<1x8x8x128xf32>
    %31 = vector.shape_cast %30 : vector<1x8x8x128xf32> to vector<64x128xf32>
    %32 = arith.truncf %31 : vector<64x128xf32> to vector<64x128xbf16>
    %33 = vector.extract_strided_slice %26 {offsets = [0, 0, 2, 0], sizes = [1, 8, 8, 128], strides = [1, 1, 1, 1]} : vector<1x10x10x128xf32> to vector<1x8x8x128xf32>
    %34 = vector.shape_cast %33 : vector<1x8x8x128xf32> to vector<64x128xf32>
    %35 = arith.truncf %34 : vector<64x128xf32> to vector<64x128xbf16>
    %36 = vector.extract_strided_slice %26 {offsets = [0, 1, 0, 0], sizes = [1, 8, 8, 128], strides = [1, 1, 1, 1]} : vector<1x10x10x128xf32> to vector<1x8x8x128xf32>
    %37 = vector.shape_cast %36 : vector<1x8x8x128xf32> to vector<64x128xf32>
    %38 = arith.truncf %37 : vector<64x128xf32> to vector<64x128xbf16>
    %39 = vector.extract_strided_slice %26 {offsets = [0, 1, 1, 0], sizes = [1, 8, 8, 128], strides = [1, 1, 1, 1]} : vector<1x10x10x128xf32> to vector<1x8x8x128xf32>
    %40 = vector.shape_cast %39 : vector<1x8x8x128xf32> to vector<64x128xf32>
    %41 = arith.truncf %40 : vector<64x128xf32> to vector<64x128xbf16>
    %42 = vector.extract_strided_slice %26 {offsets = [0, 1, 2, 0], sizes = [1, 8, 8, 128], strides = [1, 1, 1, 1]} : vector<1x10x10x128xf32> to vector<1x8x8x128xf32>
    %43 = vector.shape_cast %42 : vector<1x8x8x128xf32> to vector<64x128xf32>
    %44 = arith.truncf %43 : vector<64x128xf32> to vector<64x128xbf16>
    %45 = vector.extract_strided_slice %26 {offsets = [0, 2, 0, 0], sizes = [1, 8, 8, 128], strides = [1, 1, 1, 1]} : vector<1x10x10x128xf32> to vector<1x8x8x128xf32>
    %46 = vector.shape_cast %45 : vector<1x8x8x128xf32> to vector<64x128xf32>
    %47 = arith.truncf %46 : vector<64x128xf32> to vector<64x128xbf16>
    %48 = vector.extract_strided_slice %26 {offsets = [0, 2, 1, 0], sizes = [1, 8, 8, 128], strides = [1, 1, 1, 1]} : vector<1x10x10x128xf32> to vector<1x8x8x128xf32>
    %49 = vector.shape_cast %48 : vector<1x8x8x128xf32> to vector<64x128xf32>
    %50 = arith.truncf %49 : vector<64x128xf32> to vector<64x128xbf16>
    %51 = vector.extract_strided_slice %26 {offsets = [0, 2, 2, 0], sizes = [1, 8, 8, 128], strides = [1, 1, 1, 1]} : vector<1x10x10x128xf32> to vector<1x8x8x128xf32>
    %52 = vector.shape_cast %51 : vector<1x8x8x128xf32> to vector<64x128xf32>
    %53 = arith.truncf %52 : vector<64x128xf32> to vector<64x128xbf16>
    %54 = tpu.concatenate %29, %32, %35, %38, %41, %44, %47, %50, %53 in 1 : vector<64x128xbf16>, vector<64x128xbf16>, vector<64x128xbf16>, vector<64x128xbf16>, vector<64x128xbf16>, vector<64x128xbf16>, vector<64x128xbf16>, vector<64x128xbf16>, vector<64x128xbf16> -> vector<64x1152xbf16>
    %c0_10 = arith.constant 0 : index
    %c0_11 = arith.constant 0 : index
    %55 = vector.load %arg4[%c0_10, %c0_11] : memref<1152x128xbf16, #tpu.memory_space<vmem>>, vector<1152x128xbf16>
    %cst_12 = arith.constant dense<0.000000e+00> : vector<64x128xf32>
    %56 = tpu.matmul %54, %55, %cst_12 {dimension_numbers = #tpu.dot_dimension_numbers<[1], [0], [0], [1], [0, 0, 1, 1], [], []>} : vector<64x1152xbf16>, vector<1152x128xbf16>, vector<64x128xf32> -> vector<64x128xf32>
    %57 = arith.truncf %56 : vector<64x128xf32> to vector<64x128xbf16>
    %58 = vector.shape_cast %57 : vector<64x128xbf16> to vector<1x64x128xbf16>
    %c0_13 = arith.constant 0 : index
    %c0_14 = arith.constant 0 : index
    %c0_15 = arith.constant 0 : index
    %59 = vector.load %arg5[%c0_13, %c0_14, %c0_15] : memref<1x64x128xbf16, #tpu.memory_space<vmem>>, vector<1x64x128xbf16>
    tpu.vector_store %arg5[%c0_13, %c0_14, %c0_15], %58 {strides = array<i32>} : memref<1x64x128xbf16, #tpu.memory_space<vmem>>, vector<1x64x128xbf16>,
    %cst_16 = arith.constant dense<0.000000e+00> : vector<128xf32>
    %60 = vector.multi_reduction <add>, %56, %cst_16 [0] : vector<64x128xf32> to vector<128xf32>
    %61 = vector.shape_cast %60 : vector<128xf32> to vector<1x128xf32>
    %62 = arith.mulf %56, %56 : vector<64x128xf32>
    %cst_17 = arith.constant dense<0.000000e+00> : vector<128xf32>
    %63 = vector.multi_reduction <add>, %62, %cst_17 [0] : vector<64x128xf32> to vector<128xf32>
    %64 = vector.shape_cast %63 : vector<128xf32> to vector<1x128xf32>
    %65 = tpu.concatenate %61, %64 in 0 : vector<1x128xf32>, vector<1x128xf32> -> vector<2x128xf32>
    %66 = vector.shape_cast %65 : vector<2x128xf32> to vector<1x2x128xf32>
    %c0_18 = arith.constant 0 : index
    %c0_19 = arith.constant 0 : index
    %c0_20 = arith.constant 0 : index
    %67 = vector.load %arg6[%c0_18, %c0_19, %c0_20] : memref<1x2x128xf32, #tpu.memory_space<vmem>>, vector<1x2x128xf32>
    tpu.vector_store %arg6[%c0_18, %c0_19, %c0_20], %66 {strides = array<i32>} : memref<1x2x128xf32, #tpu.memory_space<vmem>>, vector<1x2x128xf32>,
    return
  }
  func.func @transform_0(%arg0: i32) -> (i32, i32, i32, i32) {
    %c0_i32 = arith.constant 0 : i32
    %c0_i32_0 = arith.constant 0 : i32
    %c0_i32_1 = arith.constant 0 : i32
    %c0_i32_2 = arith.constant 0 : i32
    return %arg0, %c0_i32, %c0_i32_0, %c0_i32_1 : i32, i32, i32, i32
  }
  func.func @transform_1(%arg0: i32) -> (i32, i32) {
    %c0_i32 = arith.constant 0 : i32
    %c0_i32_0 = arith.constant 0 : i32
    %c0_i32_1 = arith.constant 0 : i32
    return %c0_i32, %c0_i32_0 : i32, i32
  }
  func.func @transform_2(%arg0: i32) -> (i32, i32) {
    %c0_i32 = arith.constant 0 : i32
    %c0_i32_0 = arith.constant 0 : i32
    %c0_i32_1 = arith.constant 0 : i32
    return %c0_i32, %c0_i32_0 : i32, i32
  }
  func.func @transform_3(%arg0: i32) -> (i32, i32) {
    %c0_i32 = arith.constant 0 : i32
    %c0_i32_0 = arith.constant 0 : i32
    %c0_i32_1 = arith.constant 0 : i32
    return %c0_i32, %c0_i32_0 : i32, i32
  }
  func.func @transform_4(%arg0: i32) -> (i32, i32, i32) {
    %c0_i32 = arith.constant 0 : i32
    %c0_i32_0 = arith.constant 0 : i32
    %c0_i32_1 = arith.constant 0 : i32
    return %arg0, %c0_i32, %c0_i32_0 : i32, i32, i32
  }
  func.func @transform_5(%arg0: i32) -> (i32, i32, i32) {
    %c0_i32 = arith.constant 0 : i32
    %c0_i32_0 = arith.constant 0 : i32
    %c0_i32_1 = arith.constant 0 : i32
    return %arg0, %c0_i32, %c0_i32_0 : i32, i32, i32
  }
}

module attributes {stable_mosaic.version = 11 : i64} {
  func.func @_bn_add_relu_kernel(%arg0: i32, %arg1: memref<128x128xbf16, #tpu.memory_space<vmem>>, %arg2: memref<128x128xf32, #tpu.memory_space<vmem>>, %arg3: memref<1x128xf32, #tpu.memory_space<vmem>>, %arg4: memref<1x128xf32, #tpu.memory_space<vmem>>, %arg5: memref<128x128xf32, #tpu.memory_space<vmem>>) attributes {dimension_semantics = [#tpu.dimension_semantics<parallel>], iteration_bounds = array<i64: 1>, scalar_prefetch = 0 : i64, scratch_operands = 0 : i64, tpu.core_type = #tpu.core_type<tc>, window_params = [{transform_indices = @transform_0, window_bounds = array<i64: 128, 128>}, {transform_indices = @transform_1, window_bounds = array<i64: 128, 128>}, {pipeline_mode = #tpu.pipeline_mode<synchronous>, transform_indices = @transform_2, window_bounds = array<i64: 1, 128>}, {pipeline_mode = #tpu.pipeline_mode<synchronous>, transform_indices = @transform_3, window_bounds = array<i64: 1, 128>}, {transform_indices = @transform_4, window_bounds = array<i64: 128, 128>}]} {
    %c0 = arith.constant 0 : index
    %c0_0 = arith.constant 0 : index
    %0 = vector.load %arg1[%c0, %c0_0] : memref<128x128xbf16, #tpu.memory_space<vmem>>, vector<128x128xbf16>
    %1 = arith.extf %0 : vector<128x128xbf16> to vector<128x128xf32>
    %c0_1 = arith.constant 0 : index
    %c0_2 = arith.constant 0 : index
    %2 = vector.load %arg3[%c0_1, %c0_2] : memref<1x128xf32, #tpu.memory_space<vmem>>, vector<1x128xf32>
    %3 = vector.broadcast %2 : vector<1x128xf32> to vector<128x128xf32>
    %4 = arith.mulf %1, %3 : vector<128x128xf32>
    %c0_3 = arith.constant 0 : index
    %c0_4 = arith.constant 0 : index
    %5 = vector.load %arg4[%c0_3, %c0_4] : memref<1x128xf32, #tpu.memory_space<vmem>>, vector<1x128xf32>
    %6 = vector.broadcast %5 : vector<1x128xf32> to vector<128x128xf32>
    %7 = arith.addf %4, %6 : vector<128x128xf32>
    %c0_5 = arith.constant 0 : index
    %c0_6 = arith.constant 0 : index
    %8 = vector.load %arg2[%c0_5, %c0_6] : memref<128x128xf32, #tpu.memory_space<vmem>>, vector<128x128xf32>
    %9 = arith.addf %7, %8 : vector<128x128xf32>
    %cst = arith.constant 0.000000e+00 : f32
    %10 = vector.broadcast %cst : f32 to vector<128x128xf32>
    %11 = arith.maximumf %9, %10 : vector<128x128xf32>
    %c0_7 = arith.constant 0 : index
    %c0_8 = arith.constant 0 : index
    %12 = vector.load %arg5[%c0_7, %c0_8] : memref<128x128xf32, #tpu.memory_space<vmem>>, vector<128x128xf32>
    tpu.vector_store %arg5[%c0_7, %c0_8], %11 {strides = array<i32>} : memref<128x128xf32, #tpu.memory_space<vmem>>, vector<128x128xf32>,
    return
  }
  func.func @transform_0(%arg0: i32) -> (i32, i32) {
    %c0_i32 = arith.constant 0 : i32
    %c0_i32_0 = arith.constant 0 : i32
    return %arg0, %c0_i32 : i32, i32
  }
  func.func @transform_1(%arg0: i32) -> (i32, i32) {
    %c0_i32 = arith.constant 0 : i32
    %c0_i32_0 = arith.constant 0 : i32
    return %arg0, %c0_i32 : i32, i32
  }
  func.func @transform_2(%arg0: i32) -> (i32, i32) {
    %c0_i32 = arith.constant 0 : i32
    %c0_i32_0 = arith.constant 0 : i32
    %c0_i32_1 = arith.constant 0 : i32
    return %c0_i32, %c0_i32_0 : i32, i32
  }
  func.func @transform_3(%arg0: i32) -> (i32, i32) {
    %c0_i32 = arith.constant 0 : i32
    %c0_i32_0 = arith.constant 0 : i32
    %c0_i32_1 = arith.constant 0 : i32
    return %c0_i32, %c0_i32_0 : i32, i32
  }
  func.func @transform_4(%arg0: i32) -> (i32, i32) {
    %c0_i32 = arith.constant 0 : i32
    %c0_i32_0 = arith.constant 0 : i32
    return %arg0, %c0_i32 : i32, i32
  }
}

</mosaic_0001>

<bundles_post_ra>
// kernel: bottleneck_forward.6
= control target key start
LH: loop header
LB: loop body
LE: loop exit
PB: predicated region body
PF: predicated region fallthrough
CT: control target
= control target key end

     0   :  { %vm421_vm0 = vcmask 1040384   ;;  %s779_s3 = inlined_call_operand.vmem [shape: bf16[128,128], index: 3, kind: input, shape index: {}]   ;;  %s780_s0 = inlined_call_operand.vmem [shape: bf16[128,128], index: 0, kind: input, shape index: {}]   ;;  %s781_s1 = inlined_call_operand.vmem [shape: f32[1,128], index: 1, kind: input, shape index: {}]   ;;  %s782_s2 = inlined_call_operand.vmem [shape: f32[1,128], index: 2, kind: input, shape index: {}]   ;;  %s783_s4 = inlined_call_operand.vmem [shape: bf16[128,128], index: 4, kind: output, shape index: {0}]   ;;  %s784_s5 = inlined_call_operand.vmem [shape: f32[1,2,128], index: 5, kind: output, shape index: {1}]  }
   0x1   :  { %v624_v0 = vld [vmem:[%s779_s3] sm:$0xff]   ;;  %v625_v1 = vld [vmem:[%s779_s3 + $0x8] sm:$0xff]   ;;  %v626_v2 = vld [vmem:[%s779_s3 + $0x10] sm:$0xff]  }
   0x2   :  { %576 = vmatprep.subr.bf16.mxu0 %v624_v0  ;;  %608 = vmatprep.subr.bf16.mxu1 %v624_v0  ;;  %v627_v3 = vld [vmem:[%s779_s3 + $0x18] sm:$0xff]   ;;  %v475_v4 = vld [vmem:[%s780_s0] sm:$0xff]   ;;  %v546_v8 = vld [vmem:[%s780_s0 + $0x8] sm:$0xff]  }
   0x3   :  { %577 = vmatpush3.bf16.msra.mxu0 %v624_v0  ;;  %616 = vmatpush3.bf16.msra.mxu1 %v624_v0  ;;  %v680_v5 = vld [vmem:[%s781_s1] ss:$0 sm:$0xff]  ;;  %v476_v6 = vunpack.c.l.bf16 %v475_v4  ;;  %v477_v7 = vunpack.c.h.bf16 %v475_v4  ;;  %v547_v9 = vld [vmem:[%s780_s0 + $0x10] sm:$0xff]   ;;  %v480_v11 = vunpack.c.l.bf16 %v546_v8  ;;  %v481_v14 = vunpack.c.h.bf16 %v546_v8  ;;  %v548_v22 = vld [vmem:[%s780_s0 + $0x18] sm:$0xff]  }
   0x4   :  { %578 = vmatprep.subr.bf16.mxu0 %v625_v1  ;;  %609 = vmatprep.subr.bf16.mxu1 %v625_v1  ;;  %v691_v10 = vld [vmem:[%s782_s2] ss:$0 sm:$0xff]  ;;  %v484_v17 = vunpack.c.l.bf16 %v547_v9  ;;  %v485_v21 = vunpack.c.h.bf16 %v547_v9  ;;  %v550_v27 = vld [vmem:[%s780_s0 + $0x28] sm:$0xff]   ;;  %v551_v30 = vld [vmem:[%s780_s0 + $0x30] sm:$0xff]   ;;  %v488_v32 = vunpack.c.l.bf16 %v548_v22  ;;  %v489_v33 = vunpack.c.h.bf16 %v548_v22 }
   0x5   :  { %v59_v12 = vmul.f32 %v476_v6, %v680_v5  ;;  %v60_v13 = vmul.f32 %v477_v7, %v680_v5  ;;  %v549_v15 = vld [vmem:[%s780_s0 + $0x20] sm:$0xff]   ;;  %v61_v20 = vmul.f32 %v480_v11, %v680_v5  ;;  %v62_v26 = vmul.f32 %v481_v14, %v680_v5  ;;  %v629_v28 = vld [vmem:[%s779_s3 + $0x28] sm:$0xff]   ;;  %v552_v39 = vld [vmem:[%s780_s0 + $0x38] sm:$0xff]  }
   0x6   :  { %v628_v16 = vld [vmem:[%s779_s3 + $0x20] sm:$0xff]   ;;  %v492_v23 = vunpack.c.l.bf16 %v549_v15  ;;  %v63_v29 = vmul.f32 %v484_v17, %v680_v5  ;;  %v493_v34 = vunpack.c.h.bf16 %v549_v15  ;;  %v64_v36 = vmul.f32 %v485_v21, %v680_v5  ;;  %v630_v44 = vld [vmem:[%s779_s3 + $0x30] sm:$0xff]   ;;  %v631_v61 = vld [vmem:[%s779_s3 + $0x38] sm:$0xff]  }
   0x7   :  { %579 = vmatpush3.bf16.msra.mxu0 %v625_v1  ;;  %617 = vmatpush3.bf16.msra.mxu1 %v625_v1  ;;  %v82_v18 = vadd.f32 %v691_v10, %v59_v12  ;;  %v83_v19 = vadd.f32 %v691_v10, %v60_v13  ;;  %v84_v35 = vadd.f32 %v691_v10, %v61_v20  ;;  %v496_v38 = vunpack.c.l.bf16 %v550_v27 }
   0x8   :  { %580 = vmatprep.subr.bf16.mxu0 %v626_v2  ;;  %610 = vmatprep.subr.bf16.mxu1 %v626_v2  ;;  %v67_v37 = vmul.f32 %v492_v23, %v680_v5  ;;  %v85_v40 = vadd.f32 %v691_v10, %v62_v26  ;;  %v68_v41 = vmul.f32 %v493_v34, %v680_v5  ;;  %v497_v42 = vunpack.c.h.bf16 %v550_v27 }
   0x9   :  { %v98_v24 = vmax.f32 %v82_v18, 0.0  ;;  %v99_v25 = vmax.f32 %v83_v19, 0.0  ;;  %v500_v43 = vunpack.c.l.bf16 %v551_v30  ;;  %v86_v45 = vadd.f32 %v691_v10, %v63_v29 }
   0xa   :  { %v90_v46 = vadd.f32 %v691_v10, %v67_v37  ;;  %v69_v47 = vmul.f32 %v496_v38, %v680_v5  ;;  %v501_v48 = vunpack.c.h.bf16 %v551_v30  ;;  %v91_v49 = vadd.f32 %v691_v10, %v68_v41 }
   0xb   :  { %581 = vmatpush3.bf16.msra.mxu0 %v626_v2  ;;  %618 = vmatpush3.bf16.msra.mxu1 %v626_v2  ;;  %v114_v31 = vpack.c.bf16 %v99_v25, %v98_v24  ;;  %v70_v50 = vmul.f32 %v497_v42, %v680_v5  ;;  %v71_v51 = vmul.f32 %v500_v43, %v680_v5  ;;  %v504_v52 = vunpack.c.l.bf16 %v552_v39 }
   0xc   :  { %582 = vmatprep.subr.bf16.mxu0 %v627_v3  ;;  %611 = vmatprep.subr.bf16.mxu1 %v627_v3  ;;  %v106_v53 = vmax.f32 %v90_v46, 0.0  ;;  %v92_v54 = vadd.f32 %v691_v10, %v69_v47  ;;  %v72_v55 = vmul.f32 %v501_v48, %v680_v5  ;;  %v505_v56 = vunpack.c.h.bf16 %v552_v39 }
   0xd   :  { %592 = vmatprep.mubr.bf16.mxu0 %v114_v31  ;;  %v87_v57 = vadd.f32 %v691_v10, %v64_v36  ;;  %v107_v58 = vmax.f32 %v91_v49, 0.0  ;;  %v93_v59 = vadd.f32 %v691_v10, %v70_v50  ;;  %v94_v60 = vadd.f32 %v691_v10, %v71_v51 }
   0xe   :  { %v65_v62 = vmul.f32 %v488_v32, %v680_v5  ;;  %v95_v63 = vadd.f32 %v691_v10, %v72_v55  ;;  %v100_v0 = vmax.f32 %v84_v35, 0.0  ;;  %v101_v1 = vmax.f32 %v85_v40, 0.0 }
   0xf   :  { %583 = vmatpush3.bf16.msra.mxu0 %v627_v3  ;;  %619 = vmatpush3.bf16.msra.mxu1 %v627_v3  ;;  %v66_v2 = vmul.f32 %v489_v33, %v680_v5  ;;  %v118_v3 = vpack.c.bf16 %v107_v58, %v106_v53  ;;  %v108_v4 = vmax.f32 %v92_v54, 0.0  ;;  %v109_v6 = vmax.f32 %v93_v59, 0.0 }
  0x10   :  { %584 = vmatprep.subr.bf16.mxu0 %v628_v16  ;;  %612 = vmatprep.subr.bf16.mxu1 %v628_v16  ;;  %v73_v7 = vmul.f32 %v504_v52, %v680_v5  ;;  %v74_v8 = vmul.f32 %v505_v56, %v680_v5  ;;  %v102_v9 = vmax.f32 %v86_v45, 0.0  ;;  %v103_v11 = vmax.f32 %v87_v57, 0.0 }
  0x11   :  { %v110_v12 = vmax.f32 %v94_v60, 0.0  ;;  %v111_v13 = vmax.f32 %v95_v63, 0.0  ;;  %v88_v14 = vadd.f32 %v691_v10, %v65_v62  ;;  %v89_v15 = vadd.f32 %v691_v10, %v66_v2  ;;  %600 = vmatprep.mubr.bf16.mxu1 %v118_v3 }
  0x12   :  { %v119_v17 = vpack.c.bf16 %v109_v6, %v108_v4  ;;  %v96_v18 = vadd.f32 %v691_v10, %v73_v7  ;;  %v97_v19 = vadd.f32 %v691_v10, %v74_v8  ;;  %v116_v5 = vpack.c.bf16 %v103_v11, %v102_v9 }
  0x13   :  { %585 = vmatpush3.bf16.msra.mxu0 %v628_v16  ;;  %620 = vmatpush3.bf16.msra.mxu1 %v628_v16  ;;  %v115_v16 = vpack.c.bf16 %v101_v1, %v100_v0  ;;  %v120_v20 = vpack.c.bf16 %v111_v13, %v110_v12  ;;  %v104_v21 = vmax.f32 %v88_v14, 0.0  ;;  %v105_v22 = vmax.f32 %v89_v15, 0.0 }
  0x14   :  { %586 = vmatprep.subr.bf16.mxu0 %v629_v28  ;;  %613 = vmatprep.subr.bf16.mxu1 %v629_v28  ;;  %v112_v23 = vmax.f32 %v96_v18, 0.0  ;;  %v113_v24 = vmax.f32 %v97_v19, 0.0 }
  0x15   :  { %v117_v25 = vpack.c.bf16 %v105_v22, %v104_v21 }
  0x16   :  { %v121_v26 = vpack.c.bf16 %v113_v24, %v112_v23 }
  0x17   :  { %587 = vmatpush3.bf16.msra.mxu0 %v629_v28  ;;  %621 = vmatpush3.bf16.msra.mxu1 %v629_v28 }
  0x18   :  { %588 = vmatprep.subr.bf16.mxu0 %v630_v44  ;;  %614 = vmatprep.subr.bf16.mxu1 %v630_v44 }
  0x1b   :  { %589 = vmatpush3.bf16.msra.mxu0 %v630_v44  ;;  %622 = vmatpush3.bf16.msra.mxu1 %v630_v44 }
  0x1c   :  { %590 = vmatprep.subr.bf16.mxu0 %v631_v61  ;;  %615 = vmatprep.subr.bf16.mxu1 %v631_v61 }
  0x1f   :  { %591 = vmatpush3.bf16.msra.mxu0 %v631_v61  ;;  %623 = vmatpush3.bf16.msra.mxu1 %v631_v61 }
  0x22   :  { %593 = vmatmul.mubr.bf16.vlgmr.msra.gmra.mrb[0].mxu0 %v115_v16  ;;  %601 = vmatmul.mubr.bf16.vlgmr.msra.gmra.mrb[0].mxu1 %v119_v17 }
  0x23   :  { %596 = vmatprep.mubr.bf16.mxu0 %v116_v5  ;;  %604 = vmatprep.mubr.bf16.mxu1 %v120_v20 }
  0x2a   :  { %597 = vmatmul.mubr.bf16.gmra.mrb[4].mxu0 %v117_v25  ;;  %605 = vmatmul.mubr.bf16.gmra.mrb[4].mxu1 %v121_v26 }
  0xf5   :  { %v594_v27 = vpop.f32.mrb[0].mxu0  ;;  %v602_v28 = vpop.f32.mrb[0].mxu1 }
  0xf6   :  { %v220_v29 = vpop.f32.mrb[1].mxu0  ;;  %v252_v10 = vpop.f32.mrb[1].mxu1  ;;  %v386_v41 = vmul.f32 %v594_v27, %v594_v27  ;;  %v394_v15 = vmul.f32 %v602_v28, %v602_v28 }
  0xf7   :  { %v595_v30 = vpop.f32.mrb[2].mxu0  ;;  %v603_v31 = vpop.f32.mrb[2].mxu1  ;;  %v384_v32 = vmul.f32 %v220_v29, %v220_v29  ;;  %v392_v8 = vmul.f32 %v252_v10, %v252_v10 }
  0xf8   :  { %v514_v33 = vpack.c.bf16 %v595_v30, %v594_v27  ;;  %v223_v34 = vpop.f32.mrb[3].mxu0  ;;  %v534_v35 = vpack.c.bf16 %v603_v31, %v602_v28  ;;  %v255_v36 = vpop.f32.mrb[3].mxu1  ;;  %v387_v44 = vmul.f32 %v595_v30, %v595_v30  ;;  %v395_v18 = vmul.f32 %v603_v31, %v603_v31 }
  0xf9   :  { %v509_v37 = vpack.c.bf16 %v223_v34, %v220_v29  ;;  %v363_v38 = vadd.f32 %v223_v34, %v220_v29  ;;  %v385_v39 = vmul.f32 %v223_v34, %v223_v34  ;;  %v529_v40 = vpack.c.bf16 %v255_v36, %v252_v10 }
  0xfa   :  { %553 = vst [vmem:[%s783_s4 + $0x8] sm:$0xff] %v514_v33   ;;  %557 = vst [vmem:[%s783_s4 + $0x28] sm:$0xff] %v534_v35   ;;  %v393_v14 = vmul.f32 %v255_v36, %v255_v36 }
  0xfb   :  { %510 = vst [vmem:[%s783_s4] sm:$0xff] %v509_v37   ;;  %v364_v42 = vadd.f32 %v594_v27, %v363_v38  ;;  %v400_v43 = vadd.f32 %v385_v39, %v384_v32  ;;  %556 = vst [vmem:[%s783_s4 + $0x20] sm:$0xff] %v529_v40  }
  0xfd   :  { %v401_v45 = vadd.f32 %v400_v43, %v386_v41  ;;  %v598_v46 = vpop.f32.mrb[4].mxu0  ;;  %v365_v47 = vadd.f32 %v595_v30, %v364_v42  ;;  %v606_v48 = vpop.f32.mrb[4].mxu1 }
  0xfe   :  { %v236_v49 = vpop.f32.mrb[5].mxu0  ;;  %v268_v50 = vpop.f32.mrb[5].mxu1  ;;  %v390_v1 = vmul.f32 %v598_v46, %v598_v46  ;;  %v398_v26 = vmul.f32 %v606_v48, %v606_v48 }
  0xff   :  { %v366_v51 = vadd.f32 %v365_v47, %v236_v49  ;;  %v388_v52 = vmul.f32 %v236_v49, %v236_v49  ;;  %v402_v53 = vadd.f32 %v401_v45, %v387_v44  ;;  %v599_v54 = vpop.f32.mrb[6].mxu0  ;;  %v607_v55 = vpop.f32.mrb[6].mxu1  ;;  %v396_v20 = vmul.f32 %v268_v50, %v268_v50 }
 0x100   :  { %v524_v56 = vpack.c.bf16 %v599_v54, %v598_v46  ;;  %v239_v57 = vpop.f32.mrb[7].mxu0  ;;  %v544_v58 = vpack.c.bf16 %v607_v55, %v606_v48  ;;  %v271_v59 = vpop.f32.mrb[7].mxu1  ;;  %v391_v4 = vmul.f32 %v599_v54, %v599_v54 }
 0x101   :  { %v403_v60 = vadd.f32 %v402_v53, %v388_v52  ;;  %v519_v61 = vpack.c.bf16 %v239_v57, %v236_v49  ;;  %v367_v62 = vadd.f32 %v366_v51, %v239_v57  ;;  %v389_v63 = vmul.f32 %v239_v57, %v239_v57 }
 0x102   :  { %555 = vst [vmem:[%s783_s4 + $0x18] sm:$0xff] %v524_v56   ;;  %559 = vst [vmem:[%s783_s4 + $0x38] sm:$0xff] %v544_v58   ;;  %v539_v0 = vpack.c.bf16 %v271_v59, %v268_v50  ;;  %v397_v25 = vmul.f32 %v271_v59, %v271_v59 }
 0x103   :  { %554 = vst [vmem:[%s783_s4 + $0x10] sm:$0xff] %v519_v61   ;;  %v368_v2 = vadd.f32 %v598_v46, %v367_v62  ;;  %v404_v3 = vadd.f32 %v403_v60, %v389_v63 }
 0x104   :  { %558 = vst [vmem:[%s783_s4 + $0x30] sm:$0xff] %v539_v0  }
 0x105   :  { %v405_v6 = vadd.f32 %v404_v3, %v390_v1  ;;  %v369_v7 = vadd.f32 %v599_v54, %v368_v2 }
 0x107   :  { %v370_v9 = vadd.f32 %v369_v7, %v252_v10  ;;  %v406_v11 = vadd.f32 %v405_v6, %v391_v4  ;;  %v399_v10 = vmul.f32 %v607_v55, %v607_v55 }
 0x109   :  { %v407_v12 = vadd.f32 %v406_v11, %v392_v8  ;;  %v371_v13 = vadd.f32 %v370_v9, %v255_v36 }
 0x10b   :  { %v372_v16 = vadd.f32 %v602_v28, %v371_v13  ;;  %v408_v17 = vadd.f32 %v407_v12, %v393_v14 }
 0x10d   :  { %v409_v19 = vadd.f32 %v408_v17, %v394_v15  ;;  %v373_v5 = vadd.f32 %v603_v31, %v372_v16 }
 0x10f   :  { %v374_v21 = vadd.f32 %v373_v5, %v268_v50  ;;  %v410_v22 = vadd.f32 %v409_v19, %v395_v18 }
 0x111   :  { %v411_v23 = vadd.f32 %v410_v22, %v396_v20  ;;  %v375_v24 = vadd.f32 %v374_v21, %v271_v59 }
 0x113   :  { %v376_v27 = vadd.f32 %v606_v48, %v375_v24  ;;  %v412_v29 = vadd.f32 %v411_v23, %v397_v25 }
 0x115   :  { %v377_v30 = vadd.f32 %v607_v55, %v376_v27  ;;  %v413_v32 = vadd.f32 %v412_v29, %v398_v26 }
 0x117   :  { %v378_v33 = vrot.slane %v377_v30, 4  ;;  %v414_v34 = vadd.f32 %v413_v32, %v399_v10 }
 0x119   :  { %v379_v35 = vadd.f32 %v378_v33, %v377_v30  ;;  %v415_v28 = vrot.slane %v414_v34, 4 }
 0x11b   :  { %v380_v36 = vrot.slane %v379_v35, 2  ;;  %v416_v37 = vadd.f32 %v415_v28, %v414_v34 }
 0x11d   :  { %v381_v38 = vadd.f32 %v380_v36, %v379_v35  ;;  %v417_v31 = vrot.slane %v416_v37, 2 }
 0x11f   :  { %v382_v39 = vrot.slane %v381_v38, 1  ;;  %v418_v40 = vadd.f32 %v417_v31, %v416_v37 }
 0x121   :  { %v419_v41 = vrot.slane %v418_v40, 1  ;;  %v383_v42 = vadd.f32 %v382_v39, %v381_v38 }
 0x123   :  { %v420_v43 = vadd.f32 %v419_v41, %v418_v40 }
 0x125   :  { %v422_v44 = vsel %vm421_vm0, %v383_v42, %v420_v43 }
 0x126   :  { %423 = vst [vmem:[%s784_s5] sm:$0x3] %v422_v44 }

// kernel: bottleneck_forward.4
= control target key start
LH: loop header
LB: loop body
LE: loop exit
PB: predicated region body
PF: predicated region fallthrough
CT: control target
= control target key end

     0   :  { %vm337_vm0 = vcmask 1040384   ;;  %s626_s1 = inlined_call_operand.vmem [shape: bf16[128,128], index: 1, kind: input, shape index: {}]   ;;  %s627_s0 = inlined_call_operand.vmem [shape: f32[128,128], index: 0, kind: input, shape index: {}]   ;;  %s628_s2 = inlined_call_operand.vmem [shape: bf16[128,128], index: 2, kind: output, shape index: {0}]   ;;  %s629_s3 = inlined_call_operand.vmem [shape: f32[1,2,128], index: 3, kind: output, shape index: {1}]  }
   0x1   :  { %v499_v0 = vld [vmem:[%s626_s1] sm:$0xff]   ;;  %v500_v1 = vld [vmem:[%s626_s1 + $0x8] sm:$0xff]   ;;  %v501_v2 = vld [vmem:[%s626_s1 + $0x10] sm:$0xff]  }
   0x2   :  { %451 = vmatprep.subr.bf16.mxu0 %v499_v0  ;;  %483 = vmatprep.subr.bf16.mxu1 %v499_v0  ;;  %v502_v3 = vld [vmem:[%s626_s1 + $0x18] sm:$0xff]   ;;  %v14_v4 = vld [vmem:[%s627_s0] sm:$0xff]  ;;  %v15_v5 = vld [vmem:[%s627_s0 + $0x8] sm:$0xff] }
   0x3   :  { %452 = vmatpush3.bf16.msra.mxu0 %v499_v0  ;;  %491 = vmatpush3.bf16.msra.mxu1 %v499_v0  ;;  %v30_v6 = vpack.c.bf16 %v15_v5, %v14_v4  ;;  %v22_v7 = vld [vmem:[%s627_s0 + $0x40] sm:$0xff]  ;;  %v23_v8 = vld [vmem:[%s627_s0 + $0x48] sm:$0xff]  ;;  %v505_v12 = vld [vmem:[%s626_s1 + $0x30] sm:$0xff]  }
   0x4   :  { %453 = vmatprep.subr.bf16.mxu0 %v500_v1  ;;  %484 = vmatprep.subr.bf16.mxu1 %v500_v1  ;;  %v503_v9 = vld [vmem:[%s626_s1 + $0x20] sm:$0xff]   ;;  %v34_v10 = vpack.c.bf16 %v23_v8, %v22_v7  ;;  %v504_v11 = vld [vmem:[%s626_s1 + $0x28] sm:$0xff]   ;;  %v506_v13 = vld [vmem:[%s626_s1 + $0x38] sm:$0xff]  }
   0x5   :  { %467 = vmatprep.mubr.bf16.mxu0 %v30_v6  ;;  %v16_v14 = vld [vmem:[%s627_s0 + $0x10] sm:$0xff]  ;;  %v17_v15 = vld [vmem:[%s627_s0 + $0x18] sm:$0xff]  ;;  %v18_v16 = vld [vmem:[%s627_s0 + $0x20] sm:$0xff] }
   0x6   :  { %475 = vmatprep.mubr.bf16.mxu1 %v34_v10  ;;  %v24_v17 = vld [vmem:[%s627_s0 + $0x50] sm:$0xff]  ;;  %v25_v18 = vld [vmem:[%s627_s0 + $0x58] sm:$0xff]  ;;  %v19_v19 = vld [vmem:[%s627_s0 + $0x28] sm:$0xff]  ;;  %v31_v22 = vpack.c.bf16 %v17_v15, %v16_v14 }
   0x7   :  { %454 = vmatpush3.bf16.msra.mxu0 %v500_v1  ;;  %492 = vmatpush3.bf16.msra.mxu1 %v500_v1  ;;  %v26_v20 = vld [vmem:[%s627_s0 + $0x60] sm:$0xff]  ;;  %v27_v21 = vld [vmem:[%s627_s0 + $0x68] sm:$0xff]  ;;  %v35_v23 = vpack.c.bf16 %v25_v18, %v24_v17  ;;  %v32_v24 = vpack.c.bf16 %v19_v19, %v18_v16  ;;  %v20_v26 = vld [vmem:[%s627_s0 + $0x30] sm:$0xff] }
   0x8   :  { %455 = vmatprep.subr.bf16.mxu0 %v501_v2  ;;  %485 = vmatprep.subr.bf16.mxu1 %v501_v2  ;;  %v36_v25 = vpack.c.bf16 %v27_v21, %v26_v20  ;;  %v21_v27 = vld [vmem:[%s627_s0 + $0x38] sm:$0xff]  ;;  %v28_v28 = vld [vmem:[%s627_s0 + $0x70] sm:$0xff] }
   0x9   :  { %v29_v29 = vld [vmem:[%s627_s0 + $0x78] sm:$0xff]  ;;  %v33_v30 = vpack.c.bf16 %v21_v27, %v20_v26 }
   0xa   :  { %v37_v31 = vpack.c.bf16 %v29_v29, %v28_v28 }
   0xb   :  { %456 = vmatpush3.bf16.msra.mxu0 %v501_v2  ;;  %493 = vmatpush3.bf16.msra.mxu1 %v501_v2 }
   0xc   :  { %457 = vmatprep.subr.bf16.mxu0 %v502_v3  ;;  %486 = vmatprep.subr.bf16.mxu1 %v502_v3 }
   0xf   :  { %458 = vmatpush3.bf16.msra.mxu0 %v502_v3  ;;  %494 = vmatpush3.bf16.msra.mxu1 %v502_v3 }
  0x10   :  { %459 = vmatprep.subr.bf16.mxu0 %v503_v9  ;;  %487 = vmatprep.subr.bf16.mxu1 %v503_v9 }
  0x13   :  { %460 = vmatpush3.bf16.msra.mxu0 %v503_v9  ;;  %495 = vmatpush3.bf16.msra.mxu1 %v503_v9 }
  0x14   :  { %461 = vmatprep.subr.bf16.mxu0 %v504_v11  ;;  %488 = vmatprep.subr.bf16.mxu1 %v504_v11 }
  0x17   :  { %462 = vmatpush3.bf16.msra.mxu0 %v504_v11  ;;  %496 = vmatpush3.bf16.msra.mxu1 %v504_v11 }
  0x18   :  { %463 = vmatprep.subr.bf16.mxu0 %v505_v12  ;;  %489 = vmatprep.subr.bf16.mxu1 %v505_v12 }
  0x1b   :  { %464 = vmatpush3.bf16.msra.mxu0 %v505_v12  ;;  %497 = vmatpush3.bf16.msra.mxu1 %v505_v12 }
  0x1c   :  { %465 = vmatprep.subr.bf16.mxu0 %v506_v13  ;;  %490 = vmatprep.subr.bf16.mxu1 %v506_v13 }
  0x1f   :  { %466 = vmatpush3.bf16.msra.mxu0 %v506_v13  ;;  %498 = vmatpush3.bf16.msra.mxu1 %v506_v13 }
  0x22   :  { %468 = vmatmul.mubr.bf16.vlgmr.msra.gmra.mrb[0].mxu0 %v31_v22  ;;  %476 = vmatmul.mubr.bf16.vlgmr.msra.gmra.mrb[0].mxu1 %v35_v23 }
  0x23   :  { %471 = vmatprep.mubr.bf16.mxu0 %v32_v24  ;;  %479 = vmatprep.mubr.bf16.mxu1 %v36_v25 }
  0x2a   :  { %472 = vmatmul.mubr.bf16.gmra.mrb[4].mxu0 %v33_v30  ;;  %480 = vmatmul.mubr.bf16.gmra.mrb[4].mxu1 %v37_v31 }
  0xf5   :  { %v469_v32 = vpop.f32.mrb[0].mxu0  ;;  %v477_v33 = vpop.f32.mrb[0].mxu1 }
  0xf6   :  { %v136_v34 = vpop.f32.mrb[1].mxu0  ;;  %v168_v35 = vpop.f32.mrb[1].mxu1  ;;  %v302_v47 = vmul.f32 %v469_v32, %v469_v32  ;;  %v310_v19 = vmul.f32 %v477_v33, %v477_v33 }
  0xf7   :  { %v470_v36 = vpop.f32.mrb[2].mxu0  ;;  %v478_v37 = vpop.f32.mrb[2].mxu1  ;;  %v300_v38 = vmul.f32 %v136_v34, %v136_v34  ;;  %v308_v13 = vmul.f32 %v168_v35, %v168_v35 }
  0xf8   :  { %v396_v39 = vpack.c.bf16 %v470_v36, %v469_v32  ;;  %v139_v40 = vpop.f32.mrb[3].mxu0  ;;  %v416_v41 = vpack.c.bf16 %v478_v37, %v477_v33  ;;  %v171_v42 = vpop.f32.mrb[3].mxu1  ;;  %v303_v50 = vmul.f32 %v470_v36, %v470_v36  ;;  %v311_v22 = vmul.f32 %v478_v37, %v478_v37 }
  0xf9   :  { %v391_v43 = vpack.c.bf16 %v139_v40, %v136_v34  ;;  %v279_v44 = vadd.f32 %v139_v40, %v136_v34  ;;  %v301_v45 = vmul.f32 %v139_v40, %v139_v40  ;;  %v411_v46 = vpack.c.bf16 %v171_v42, %v168_v35 }
  0xfa   :  { %428 = vst [vmem:[%s628_s2 + $0x8] sm:$0xff] %v396_v39   ;;  %432 = vst [vmem:[%s628_s2 + $0x28] sm:$0xff] %v416_v41   ;;  %v309_v18 = vmul.f32 %v171_v42, %v171_v42 }
  0xfb   :  { %392 = vst [vmem:[%s628_s2] sm:$0xff] %v391_v43   ;;  %v280_v48 = vadd.f32 %v469_v32, %v279_v44  ;;  %v316_v49 = vadd.f32 %v301_v45, %v300_v38  ;;  %431 = vst [vmem:[%s628_s2 + $0x20] sm:$0xff] %v411_v46  }
  0xfd   :  { %v317_v51 = vadd.f32 %v316_v49, %v302_v47  ;;  %v473_v52 = vpop.f32.mrb[4].mxu0  ;;  %v281_v53 = vadd.f32 %v470_v36, %v280_v48  ;;  %v481_v54 = vpop.f32.mrb[4].mxu1 }
  0xfe   :  { %v152_v55 = vpop.f32.mrb[5].mxu0  ;;  %v184_v56 = vpop.f32.mrb[5].mxu1  ;;  %v306_v7 = vmul.f32 %v473_v52, %v473_v52  ;;  %v314_v31 = vmul.f32 %v481_v54, %v481_v54 }
  0xff   :  { %v282_v57 = vadd.f32 %v281_v53, %v152_v55  ;;  %v304_v58 = vmul.f32 %v152_v55, %v152_v55  ;;  %v318_v59 = vadd.f32 %v317_v51, %v303_v50  ;;  %v474_v60 = vpop.f32.mrb[6].mxu0  ;;  %v482_v61 = vpop.f32.mrb[6].mxu1  ;;  %v312_v25 = vmul.f32 %v184_v56, %v184_v56 }
 0x100   :  { %v406_v62 = vpack.c.bf16 %v474_v60, %v473_v52  ;;  %v155_v63 = vpop.f32.mrb[7].mxu0  ;;  %v426_v0 = vpack.c.bf16 %v482_v61, %v481_v54  ;;  %v187_v1 = vpop.f32.mrb[7].mxu1  ;;  %v307_v10 = vmul.f32 %v474_v60, %v474_v60 }
 0x101   :  { %v319_v2 = vadd.f32 %v318_v59, %v304_v58  ;;  %v401_v3 = vpack.c.bf16 %v155_v63, %v152_v55  ;;  %v283_v4 = vadd.f32 %v282_v57, %v155_v63  ;;  %v305_v5 = vmul.f32 %v155_v63, %v155_v63 }
 0x102   :  { %430 = vst [vmem:[%s628_s2 + $0x18] sm:$0xff] %v406_v62   ;;  %434 = vst [vmem:[%s628_s2 + $0x38] sm:$0xff] %v426_v0   ;;  %v421_v6 = vpack.c.bf16 %v187_v1, %v184_v56  ;;  %v313_v30 = vmul.f32 %v187_v1, %v187_v1 }
 0x103   :  { %429 = vst [vmem:[%s628_s2 + $0x10] sm:$0xff] %v401_v3   ;;  %v284_v8 = vadd.f32 %v473_v52, %v283_v4  ;;  %v320_v9 = vadd.f32 %v319_v2, %v305_v5 }
 0x104   :  { %433 = vst [vmem:[%s628_s2 + $0x30] sm:$0xff] %v421_v6  }
 0x105   :  { %v321_v11 = vadd.f32 %v320_v9, %v306_v7  ;;  %v285_v12 = vadd.f32 %v474_v60, %v284_v8 }
 0x107   :  { %v286_v14 = vadd.f32 %v285_v12, %v168_v35  ;;  %v322_v15 = vadd.f32 %v321_v11, %v307_v10  ;;  %v315_v35 = vmul.f32 %v482_v61, %v482_v61 }
 0x109   :  { %v323_v16 = vadd.f32 %v322_v15, %v308_v13  ;;  %v287_v17 = vadd.f32 %v286_v14, %v171_v42 }
 0x10b   :  { %v288_v20 = vadd.f32 %v477_v33, %v287_v17  ;;  %v324_v21 = vadd.f32 %v323_v16, %v309_v18 }
 0x10d   :  { %v325_v23 = vadd.f32 %v324_v21, %v310_v19  ;;  %v289_v24 = vadd.f32 %v478_v37, %v288_v20 }
 0x10f   :  { %v290_v26 = vadd.f32 %v289_v24, %v184_v56  ;;  %v326_v27 = vadd.f32 %v325_v23, %v311_v22 }
 0x111   :  { %v327_v28 = vadd.f32 %v326_v27, %v312_v25  ;;  %v291_v29 = vadd.f32 %v290_v26, %v187_v1 }
 0x113   :  { %v292_v32 = vadd.f32 %v481_v54, %v291_v29  ;;  %v328_v34 = vadd.f32 %v327_v28, %v313_v30 }
 0x115   :  { %v293_v36 = vadd.f32 %v482_v61, %v292_v32  ;;  %v329_v38 = vadd.f32 %v328_v34, %v314_v31 }
 0x117   :  { %v294_v39 = vrot.slane %v293_v36, 4  ;;  %v330_v40 = vadd.f32 %v329_v38, %v315_v35 }
 0x119   :  { %v295_v41 = vadd.f32 %v294_v39, %v293_v36  ;;  %v331_v33 = vrot.slane %v330_v40, 4 }
 0x11b   :  { %v296_v42 = vrot.slane %v295_v41, 2  ;;  %v332_v43 = vadd.f32 %v331_v33, %v330_v40 }
 0x11d   :  { %v297_v44 = vadd.f32 %v296_v42, %v295_v41  ;;  %v333_v37 = vrot.slane %v332_v43, 2 }
 0x11f   :  { %v298_v45 = vrot.slane %v297_v44, 1  ;;  %v334_v46 = vadd.f32 %v333_v37, %v332_v43 }
 0x121   :  { %v335_v47 = vrot.slane %v334_v46, 1  ;;  %v299_v48 = vadd.f32 %v298_v45, %v297_v44 }
 0x123   :  { %v336_v49 = vadd.f32 %v335_v47, %v334_v46 }
 0x125   :  { %v338_v50 = vsel %vm337_vm0, %v299_v48, %v336_v49 }
 0x126   :  { %339 = vst [vmem:[%s629_s3] sm:$0x3] %v338_v50 }

// kernel: bottleneck_forward.7
= control target key start
LH: loop header
LB: loop body
LE: loop exit
PB: predicated region body
PF: predicated region fallthrough
CT: control target
= control target key end

     0   :  { %s398_s0 = inlined_call_operand.vmem [shape: bf16[128,128], index: 0, kind: input, shape index: {}]   ;;  %s399_s1 = inlined_call_operand.vmem [shape: f32[128,128], index: 1, kind: input, shape index: {}]   ;;  %s400_s2 = inlined_call_operand.vmem [shape: f32[1,128], index: 2, kind: input, shape index: {}]   ;;  %s401_s3 = inlined_call_operand.vmem [shape: f32[1,128], index: 3, kind: input, shape index: {}]   ;;  %s402_s4 = inlined_call_operand.hbm [shape: f32[128,128], index: 4, kind: output, shape index: {}]  }
   0x1   :  { %v179_v0 = vld [vmem:[%s398_s0] sm:$0xff]   ;;  %v210_v4 = vld [vmem:[%s398_s0 + $0x8] sm:$0xff]   ;;  %v211_v8 = vld [vmem:[%s398_s0 + $0x10] sm:$0xff]  }
   0x2   :  { %v278_v1 = vld [vmem:[%s400_s2] ss:$0 sm:$0xff]  ;;  %v180_v2 = vunpack.c.l.bf16 %v179_v0  ;;  %v181_v3 = vunpack.c.h.bf16 %v179_v0  ;;  %v184_v6 = vunpack.c.l.bf16 %v210_v4  ;;  %v185_v7 = vunpack.c.h.bf16 %v210_v4  ;;  %v212_v13 = vld [vmem:[%s398_s0 + $0x18] sm:$0xff]   ;;  %v97_v15 = vld [vmem:[%s399_s1 + $0x8] sm:$0xff] }
   0x3   :  { %v286_v5 = vld [vmem:[%s401_s3] ss:$0 sm:$0xff]  ;;  %v188_v11 = vunpack.c.l.bf16 %v211_v8  ;;  %v189_v12 = vunpack.c.h.bf16 %v211_v8  ;;  %v192_v18 = vunpack.c.l.bf16 %v212_v13  ;;  %v193_v19 = vunpack.c.h.bf16 %v212_v13  ;;  %v98_v22 = vld [vmem:[%s399_s1 + $0x10] sm:$0xff]  ;;  %v99_v23 = vld [vmem:[%s399_s1 + $0x18] sm:$0xff] }
   0x4   :  { %v57_v9 = vmul.f32 %v180_v2, %v278_v1  ;;  %v58_v10 = vmul.f32 %v181_v3, %v278_v1  ;;  %v96_v14 = vld [vmem:[%s399_s1] sm:$0xff]  ;;  %v59_v16 = vmul.f32 %v184_v6, %v278_v1  ;;  %v60_v17 = vmul.f32 %v185_v7, %v278_v1  ;;  %v101_v29 = vld [vmem:[%s399_s1 + $0x28] sm:$0xff]  ;;  %v102_v36 = vld [vmem:[%s399_s1 + $0x30] sm:$0xff] }
   0x5   :  { %v61_v24 = vmul.f32 %v188_v11, %v278_v1  ;;  %v62_v25 = vmul.f32 %v189_v12, %v278_v1  ;;  %v100_v28 = vld [vmem:[%s399_s1 + $0x20] sm:$0xff]  ;;  %v63_v30 = vmul.f32 %v192_v18, %v278_v1  ;;  %v64_v31 = vmul.f32 %v193_v19, %v278_v1  ;;  %v103_v37 = vld [vmem:[%s399_s1 + $0x38] sm:$0xff] }
   0x6   :  { %v80_v20 = vadd.f32 %v286_v5, %v57_v9  ;;  %v81_v21 = vadd.f32 %v286_v5, %v58_v10  ;;  %v82_v26 = vadd.f32 %v286_v5, %v59_v16  ;;  %v83_v27 = vadd.f32 %v286_v5, %v60_v17  ;;  %v213_v42 = vld [vmem:[%s398_s0 + $0x20] sm:$0xff]  }
   0x7   :  { %v84_v34 = vadd.f32 %v286_v5, %v61_v24  ;;  %v85_v35 = vadd.f32 %v286_v5, %v62_v25  ;;  %v86_v40 = vadd.f32 %v286_v5, %v63_v30  ;;  %v87_v41 = vadd.f32 %v286_v5, %v64_v31 }
   0x8   :  { %v112_v32 = vadd.f32 %v96_v14, %v80_v20  ;;  %v113_v33 = vadd.f32 %v97_v15, %v81_v21  ;;  %v114_v38 = vadd.f32 %v98_v22, %v82_v26  ;;  %v115_v39 = vadd.f32 %v99_v23, %v83_v27 }
   0x9   :  { %9 = vsyncpa [#allocation3], 0  ;;  %v116_v45 = vadd.f32 %v100_v28, %v84_v34  ;;  %v117_v46 = vadd.f32 %v101_v29, %v85_v35  ;;  %v214_v47 = vld [vmem:[%s398_s0 + $0x28] sm:$0xff]   ;;  %v118_v50 = vadd.f32 %v102_v36, %v86_v40  ;;  %v119_v51 = vadd.f32 %v103_v37, %v87_v41  ;;  %v215_v52 = vld [vmem:[%s398_s0 + $0x30] sm:$0xff]   ;;  %s244_s10 = smov [#allocation2]  }
   0xa   :  { %v128_v43 = vmax.f32 %v112_v32, 0.0  ;;  %v129_v44 = vmax.f32 %v113_v33, 0.0  ;;  %v130_v48 = vmax.f32 %v114_v38, 0.0  ;;  %v131_v49 = vmax.f32 %v115_v39, 0.0  ;;  %v216_v57 = vld [vmem:[%s398_s0 + $0x38] sm:$0xff]   ;;  %v104_v3 = vld [vmem:[%s399_s1 + $0x40] sm:$0xff] }
   0xb   :  { %v132_v53 = vmax.f32 %v116_v45, 0.0  ;;  %v133_v54 = vmax.f32 %v117_v46, 0.0  ;;  %v196_v55 = vunpack.c.l.bf16 %v213_v42  ;;  %v197_v56 = vunpack.c.h.bf16 %v213_v42  ;;  %v105_v4 = vld [vmem:[%s399_s1 + $0x48] sm:$0xff]  ;;  %v106_v12 = vld [vmem:[%s399_s1 + $0x50] sm:$0xff]  ;;  %v107_v13 = vld [vmem:[%s399_s1 + $0x58] sm:$0xff]  ;;  %s165_s11 = sshll.u32 %s244_s10, 4  ;;  %s166_s11 = int_to_ptr.vmem [resolvable:$true] %s165_s11 }
   0xc   :  { %144 = vst [vmem:[#allocation2] sm:$0xff] %v128_v43  ;;  %145 = vst [vmem:[#allocation2 + $0x8] sm:$0xff] %v129_v44  ;;  %v134_v58 = vmax.f32 %v118_v50, 0.0  ;;  %v135_v59 = vmax.f32 %v119_v51, 0.0  ;;  %v200_v60 = vunpack.c.l.bf16 %v214_v47  ;;  %v201_v61 = vunpack.c.h.bf16 %v214_v47  ;;  %v108_v18 = vld [vmem:[%s399_s1 + $0x60] sm:$0xff]  ;;  %v109_v19 = vld [vmem:[%s399_s1 + $0x68] sm:$0xff]  ;;  %p225_p1 = scmp.lt.s32.totalorder %s166_s11, %s166_s11 }
   0xd   :  { %146 = vst [vmem:[#allocation2 + $0x10] sm:$0xff] %v130_v48  ;;  %147 = vst [vmem:[#allocation2 + $0x18] sm:$0xff] %v131_v49  ;;  %v65_v62 = vmul.f32 %v196_v55, %v278_v1  ;;  %v66_v63 = vmul.f32 %v197_v56, %v278_v1  ;;  %v204_v0 = vunpack.c.l.bf16 %v215_v52  ;;  %v205_v2 = vunpack.c.h.bf16 %v215_v52  ;;  %v110_v26 = vld [vmem:[%s399_s1 + $0x70] sm:$0xff]  ;;  %v111_v27 = vld [vmem:[%s399_s1 + $0x78] sm:$0xff]  ;;  %s220_s1 = scalar_lea.vmem %s166_s11, 2048 }
   0xe   :  { %148 = vst [vmem:[#allocation2 + $0x20] sm:$0xff] %v132_v53  ;;  %149 = vst [vmem:[#allocation2 + $0x28] sm:$0xff] %v133_v54  ;;  %v67_v6 = vmul.f32 %v200_v60, %v278_v1  ;;  %v68_v7 = vmul.f32 %v201_v61, %v278_v1  ;;  %v208_v8 = vunpack.c.l.bf16 %v216_v57  ;;  %v209_v9 = vunpack.c.h.bf16 %v216_v57  ;;  %p221_p0 = scmp.ne.s32.totalorder %s166_s11, %s220_s1  ;;  %p226_p2 = scmp.lt.s32.totalorder %s220_s1, %s220_s1 }
   0xf   :  { %150 = vst [vmem:[#allocation2 + $0x30] sm:$0xff] %v134_v58  ;;  %151 = vst [vmem:[#allocation2 + $0x38] sm:$0xff] %v135_v59  ;;  %v88_v10 = vadd.f32 %v286_v5, %v65_v62  ;;  %v89_v11 = vadd.f32 %v286_v5, %v66_v63  ;;  %v69_v14 = vmul.f32 %v204_v0, %v278_v1 }
  0x10   :  { %v70_v15 = vmul.f32 %v205_v2, %v278_v1  ;;  %v90_v16 = vadd.f32 %v286_v5, %v67_v6  ;;  %v91_v17 = vadd.f32 %v286_v5, %v68_v7  ;;  %v71_v20 = vmul.f32 %v208_v8, %v278_v1  ;;  %p227_p3 = por %p226_p2, %p225_p1 }
  0x11   :  { %v72_v21 = vmul.f32 %v209_v9, %v278_v1  ;;  %v120_v22 = vadd.f32 %v104_v3, %v88_v10  ;;  %v121_v23 = vadd.f32 %v105_v4, %v89_v11  ;;  %v92_v24 = vadd.f32 %v286_v5, %v69_v14 }
  0x12   :  { %v93_v25 = vadd.f32 %v286_v5, %v70_v15  ;;  %v122_v28 = vadd.f32 %v106_v12, %v90_v16  ;;  %v123_v29 = vadd.f32 %v107_v13, %v91_v17  ;;  %v94_v30 = vadd.f32 %v286_v5, %v71_v20  ;;  %p228_p4 = pnand %p227_p3, %p221_p0 }
  0x13   :  { %v95_v1 = vadd.f32 %v286_v5, %v72_v21  ;;  %v136_v31 = vmax.f32 %v120_v22, 0.0  ;;  %v137_v32 = vmax.f32 %v121_v23, 0.0  ;;  %v124_v33 = vadd.f32 %v108_v18, %v92_v24 }
  0x14   :  { %v125_v34 = vadd.f32 %v109_v19, %v93_v25  ;;  %v138_v35 = vmax.f32 %v122_v28, 0.0  ;;  %v139_v36 = vmax.f32 %v123_v29, 0.0  ;;  %v126_v37 = vadd.f32 %v110_v26, %v94_v30 }
  0x15   :  { %v127_v38 = vadd.f32 %v111_v27, %v95_v1  ;;  %152 = vst [vmem:[#allocation2 + $0x40] sm:$0xff] %v136_v31  ;;  %153 = vst [vmem:[#allocation2 + $0x48] sm:$0xff] %v137_v32  ;;  %v140_v39 = vmax.f32 %v124_v33, 0.0 }
  0x16   :  { %v141_v40 = vmax.f32 %v125_v34, 0.0  ;;  %154 = vst [vmem:[#allocation2 + $0x50] sm:$0xff] %v138_v35  ;;  %155 = vst [vmem:[#allocation2 + $0x58] sm:$0xff] %v139_v36  ;;  %v142_v41 = vmax.f32 %v126_v37, 0.0 }
  0x17   :  { %v143_v42 = vmax.f32 %v127_v38, 0.0  ;;  %156 = vst [vmem:[#allocation2 + $0x60] sm:$0xff] %v140_v39 }
  0x18   :  { %157 = vst [vmem:[#allocation2 + $0x68] sm:$0xff] %v141_v40  ;;  %158 = vst [vmem:[#allocation2 + $0x70] sm:$0xff] %v142_v41 }
  0x19   :  { %159 = vst [vmem:[#allocation2 + $0x78] sm:$0xff] %v143_v42 }
  0x1a   :  { %231 = shalt.err (!%p228_p4)
}
  0x1b   :  { %s232_s14 = scalar_lea.hbm %s402_s4, 2048 }
  0x1c   :  { %p233_p5 = scmp.ne.s32.totalorder %s402_s4, %s232_s14  ;;  %p236_p6 = scmp.lt.u32.totalorder %s232_s14, %s402_s4 }
  0x1e   :  { %p238_p7 = pnand %p236_p6, %p233_p5 }
  0x20   :  { %241 = shalt.err (!%p238_p7)
}
  0x21   :  { %s245_s19 = smov 128   ;;  %s246_s20 = smov 8  }
  0x22   :  { %171 = dma.vmem_to_hbm [thread:$0]  %s166_s11, 2048, %s402_s4, [#allocation3], %s245_s19, %s245_s19, %s246_s20  }
  0x23   :  { %242 = dma.done.wait [#allocation3], 2048  }
  0x24   :  { %243 = vsyncadd [#allocation3], 4294965248 }
  0x25   :  { %175 = vsyncpa [#allocation3], 1 }

// kernel: bottleneck_forward.5
= control target key start
LH: loop header
LB: loop body
LE: loop exit
PB: predicated region body
PF: predicated region fallthrough
CT: control target
= control target key end

     0   :  { %s2075_s18 = smov 0   ;;  %s2595_s0 = inlined_call_operand.vmem [shape: bf16[2,10,10,128], index: 0, kind: input, shape index: {}]   ;;  %s2596_s1 = inlined_call_operand.vmem [shape: f32[1,128], index: 1, kind: input, shape index: {}]   ;;  %s2597_s2 = inlined_call_operand.vmem [shape: f32[1,128], index: 2, kind: input, shape index: {}]   ;;  %s2598_s3 = inlined_call_operand.vmem [shape: bf16[1152,128], index: 3, kind: input, shape index: {}]   ;;  %s2599_s4 = inlined_call_operand.vmem [shape: bf16[2,64,128], index: 4, kind: output, shape index: {0}]   ;;  %s2600_s5 = inlined_call_operand.vmem [shape: f32[2,2,128], index: 5, kind: output, shape index: {1}]  }
   0x1 LB: > { %s1579_s19 = sadd.s32 4294967295, %s2041_s18   ;;  %p1583_p0 = scmp.ge.s32.totalorder %s2041_s18, 1  ;;  %s2041_s18 = sphi %s2075_s18, %s16_s18  }
   0x2   : > { %p190_p1 = scmp.lt.s32.totalorder %s2041_s18, 3 }
   0x4   : > { %p191_p2 = pnand %p1583_p0, %p190_p1 }
   0x5   : > { %v1963_v0 = vld [vmem:[%s2598_s3 + $0x40] sm:$0xff] (!%p191_p2)   ;;  %v1967_v4 = vld [vmem:[%s2598_s3 + $0x48] sm:$0xff] (!%p191_p2)   ;;  %v1971_v8 = vld [vmem:[%s2598_s3 + $0x50] sm:$0xff] (!%p191_p2)   ;;  %p222_p3 = scmp.lt.s32.totalorder (!%p191_p2), %s1579_s19, 1  ;;  %v351_v23 = vlaneseq (!%p191_p2)  ;;  %vm406_vm1 = vcmask (!%p191_p2), 1046528   ;;  %vm2043_vm3 = vmmov (!%p191_p2), 1  }
   0x6   : > { %194 = sbr.rel (%p191_p2) target bundleno = 354 (0x162), region = 36  ;;  %v1964_v1 = vld [vmem:[%s2598_s3 + $0xc0] sm:$0xff] (!%p191_p2)   ;;  %1740 = vmatprep.subr.bf16.mxu0 (!%p191_p2), %v1963_v0  ;;  %v1968_v5 = vld [vmem:[%s2598_s3 + $0xc8] sm:$0xff] (!%p191_p2)   ;;  %v1972_v9 = vld [vmem:[%s2598_s3 + $0xd0] sm:$0xff] (!%p191_p2)   ;;  %v2044_v61 = vmov (!%p191_p2), 0.0   ;;  %vm443_vm5 = vcmask (!%p191_p2), 1045504  }
   0x7   : > { %v1965_v2 = vld [vmem:[%s2598_s3] sm:$0xff] (!%p191_p2)   ;;  %1780 = vmatprep.subr.bf16.mxu1 (!%p191_p2), %v1964_v1  ;;  %v1969_v6 = vld [vmem:[%s2598_s3 + $0x8] sm:$0xff] (!%p191_p2)   ;;  %v1973_v10 = vld [vmem:[%s2598_s3 + $0x10] sm:$0xff] (!%p191_p2)   ;;  %v2171_v28 = vshrl.u32 (!%p191_p2), %v351_v23, 7  ;;  %v2239_v62 = vrot.slane (!%p191_p2), %v2044_v61, 1  ;;  %vm1490_vm8 = vcmask (!%p191_p2), 1040384  }
   0x8   : > { %v1966_v3 = vld [vmem:[%s2598_s3 + $0x80] sm:$0xff] (!%p191_p2)   ;;  %1741 = vmatpush3.bf16.msra.mxu0 (!%p191_p2), %v1965_v2  ;;  %v1970_v7 = vld [vmem:[%s2598_s3 + $0x88] sm:$0xff] (!%p191_p2)   ;;  %v1974_v11 = vld [vmem:[%s2598_s3 + $0x90] sm:$0xff] (!%p191_p2)  }
   0x9   : > { %1781 = vmatpush3.bf16.msra.mxu1 (!%p191_p2), %v1966_v3  ;;  %1742 = vmatprep.subr.bf16.mxu0 (!%p191_p2), %v1967_v4  ;;  %v1975_v12 = vld [vmem:[%s2598_s3 + $0x58] sm:$0xff] (!%p191_p2)   ;;  %v1979_v16 = vld [vmem:[%s2598_s3 + $0x60] sm:$0xff] (!%p191_p2)   ;;  %v1983_v20 = vld [vmem:[%s2598_s3 + $0x68] sm:$0xff] (!%p191_p2)   ;;  %v2191_v33 = vadd.s32 (!%p191_p2), 8, %v2171_v28  ;;  %vm354_vm0 = vcmp.ge.s32.totalorder (!%p191_p2), %v2171_v28, 1  ;;  %v2252_v3 = vrot.slane (!%p191_p2), %v2044_v61, 2 }
   0xa   : > { %1782 = vmatprep.subr.bf16.mxu1 (!%p191_p2), %v1968_v5  ;;  %v1976_v13 = vld [vmem:[%s2598_s3 + $0xd8] sm:$0xff] (!%p191_p2)   ;;  %v1980_v17 = vld [vmem:[%s2598_s3 + $0xe0] sm:$0xff] (!%p191_p2)   ;;  %v1984_v21 = vld [vmem:[%s2598_s3 + $0xe8] sm:$0xff] (!%p191_p2)  }
   0xb   : > { %v1977_v14 = vld [vmem:[%s2598_s3 + $0x18] sm:$0xff] (!%p191_p2)   ;;  %v1981_v18 = vld [vmem:[%s2598_s3 + $0x20] sm:$0xff] (!%p191_p2)   ;;  %v1985_v22 = vld [vmem:[%s2598_s3 + $0x28] sm:$0xff] (!%p191_p2)   ;;  %vm361_vm2 = vcmp.le.s32.totalorder (!%p191_p2), %v2191_v33, 8 }
   0xc   : > { %1743 = vmatpush3.bf16.msra.mxu0 (!%p191_p2), %v1969_v6  ;;  %v1978_v15 = vld [vmem:[%s2598_s3 + $0x98] sm:$0xff] (!%p191_p2)   ;;  %v1982_v19 = vld [vmem:[%s2598_s3 + $0xa0] sm:$0xff] (!%p191_p2)   ;;  %v1986_v24 = vld [vmem:[%s2598_s3 + $0xa8] sm:$0xff] (!%p191_p2)  }
   0xd   : > { %1783 = vmatpush3.bf16.msra.mxu1 %v1970_v7  ;;  %1744 = vmatprep.subr.bf16.mxu0 %v1971_v8  ;;  %s2608_s19 = smov (!%p222_p3, %s1579_s19), 1  ;;  %v1987_v25 = vld [vmem:[%s2598_s3 + $0x70] sm:$0xff]   ;;  %v1991_v30 = vld [vmem:[%s2598_s3 + $0x78] sm:$0xff]   ;;  %v2203_v42 = vld [vmem:[%s2596_s1] ss:$0 sm:$0xff] }
   0xe   : > { %1784 = vmatprep.subr.bf16.mxu1 %v1972_v9  ;;  %v1988_v26 = vld [vmem:[%s2598_s3 + $0xf0] sm:$0xff]   ;;  %s1952_s26 = smul.u32 80, %s2608_s19  ;;  %v1992_v31 = vld [vmem:[%s2598_s3 + $0xf8] sm:$0xff]   ;;  %v2208_v43 = vld [vmem:[%s2597_s2] ss:$0 sm:$0xff]  ;;  %s1708_s11 = sshll.u32 %s2608_s19, 5 }
   0xf   : > { %v1989_v27 = vld [vmem:[%s2598_s3 + $0x30] sm:$0xff]   ;;  %v1993_v32 = vld [vmem:[%s2598_s3 + $0x38] sm:$0xff]   ;;  %v1995_v48 = vld [vmem:[%s2598_s3 + $0x140] sm:$0xff]   ;;  %s231_s15 = scalar_lea.vmem %s2599_s4, %s1708_s11  ;;  %s1587_s16 = sshll.u32 %s2608_s19, 1 }
  0x10   : > { %1745 = vmatpush3.bf16.msra.mxu0 %v1973_v10  ;;  %v1990_v29 = vld [vmem:[%s2598_s3 + $0xb0] sm:$0xff]   ;;  %s2185_s12 = scalar_lea.vmem %s2595_s0, %s1952_s26  ;;  %v1994_v34 = vld [vmem:[%s2598_s3 + $0xb8] sm:$0xff]   ;;  %v1996_v49 = vld [vmem:[%s2598_s3 + $0x1c0] sm:$0xff]   ;;  %s235_s21 = scalar_lea.vmem %s2600_s5, %s1587_s16 }
  0x11   : > { %1785 = vmatpush3.bf16.msra.mxu1 %v1974_v11  ;;  %1746 = vmatprep.subr.bf16.mxu0 %v1975_v12  ;;  %v239_v35 = vld [vmem:[%s2185_s12 + $0x8] ss:$8 sps:$4 sm:$0xff]   ;;  %v240_v36 = vld [vmem:[%s2185_s12 + $0xc] sm:$0x1]  ;;  %v242_v37 = vld [vmem:[%s2185_s12 + $0x14] sm:$0x1] }
  0x12   : > { %1786 = vmatprep.subr.bf16.mxu1 %v1976_v13  ;;  %v259_v38 = vunpack.c.l.bf16 %v239_v35  ;;  %v260_v39 = vunpack.c.l.bf16 %v240_v36  ;;  %v261_v40 = vunpack.c.h.bf16 %v239_v35  ;;  %v262_v41 = vunpack.c.l.bf16 %v242_v37  ;;  %vm2230_vm4 = vmpackc.low %vm2043_vm3, %vm354_vm0  ;;  %v1997_v8 = vld [vmem:[%s2598_s3 + $0x100] sm:$0xff]   ;;  %v2003_v35 = vld [vmem:[%s2598_s3 + $0x150] sm:$0xff]  }
  0x13   : > { %vm2247_vm6 = vmpackc.low %vm354_vm0, %vm354_vm0  ;;  %v1998_v12 = vld [vmem:[%s2598_s3 + $0x180] sm:$0xff]  }
  0x14   : > { %1747 = vmatpush3.bf16.msra.mxu0 %v1977_v14  ;;  %v287_v44 = vmul.f32 %v2203_v42, %v259_v38  ;;  %v288_v45 = vmul.f32 %v2203_v42, %v260_v39  ;;  %v289_v46 = vmul.f32 %v2203_v42, %v261_v40  ;;  %v290_v47 = vmul.f32 %v2203_v42, %v262_v41  ;;  %vm2258_vm7 = vmpackc.low %vm354_vm0, %vm2043_vm3  ;;  %v243_v13 = vld [vmem:[%s2185_s12 + $0x18] ss:$8 sps:$4 sm:$0xff]   ;;  %v244_v14 = vld [vmem:[%s2185_s12 + $0x1c] sm:$0x1] }
  0x15   : > { %1787 = vmatpush3.bf16.msra.mxu1 %v1978_v15  ;;  %1748 = vmatprep.subr.bf16.mxu0 %v1979_v16  ;;  %v265_v23 = vunpack.c.h.bf16 %v243_v13  ;;  %v2004_v38 = vld [vmem:[%s2598_s3 + $0x1d0] sm:$0xff]  }
  0x16   : > { %1788 = vmatprep.subr.bf16.mxu1 %v1980_v17  ;;  %v313_v50 = vadd.f32 %v2208_v43, %v287_v44  ;;  %v314_v51 = vadd.f32 %v2208_v43, %v288_v45  ;;  %v315_v52 = vadd.f32 %v2208_v43, %v289_v46  ;;  %v316_v53 = vadd.f32 %v2208_v43, %v290_v47  ;;  %v1999_v17 = vld [vmem:[%s2598_s3 + $0x148] sm:$0xff]   ;;  %v2005_v40 = vld [vmem:[%s2598_s3 + $0x110] sm:$0xff]  }
  0x17   : > { %v2006_v41 = vld [vmem:[%s2598_s3 + $0x190] sm:$0xff]  }
  0x18   : > { %1749 = vmatpush3.bf16.msra.mxu0 %v1981_v18  ;;  %v333_v54 = vmax.f32 %v313_v50, 0.0  ;;  %v334_v55 = vmax.f32 %v314_v51, 0.0  ;;  %v2225_v56 = vmax.f32 %v315_v52, 0.0  ;;  %v336_v57 = vmax.f32 %v316_v53, 0.0  ;;  %v246_v50 = vld [vmem:[%s2185_s12 + $0x24] sm:$0x1] }
  0x19   : > { %1789 = vmatpush3.bf16.msra.mxu1 %v1982_v19  ;;  %1750 = vmatprep.subr.bf16.mxu0 %v1983_v20  ;;  %v263_v18 = vunpack.c.l.bf16 %v243_v13  ;;  %v247_v51 = vld [vmem:[%s2185_s12 + $0x28] ss:$8 sps:$4 sm:$0xff]  }
  0x1a   : > { %1790 = vmatprep.subr.bf16.mxu1 %v1984_v21  ;;  %v368_v59 = vsel %vm354_vm0, %v333_v54, 0.0  ;;  %v369_v60 = vsel %vm361_vm2, %v334_v55, 0.0  ;;  %v370_v63 = vsel %vm354_vm0, %v2225_v56, 0.0  ;;  %v1675_v6 = vpack.c.bf16 %v2225_v56, %v333_v54  ;;  %v2000_v21 = vld [vmem:[%s2598_s3 + $0x1c8] sm:$0xff]  }
  0x1b   : > { %v410_v0 = vrot.slane %v368_v59, 1  ;;  %v411_v1 = vrot.slane %v369_v60, 1  ;;  %v447_v4 = vrot.slane %v368_v59, 2  ;;  %v448_v5 = vrot.slane %v369_v60, 2  ;;  %v248_v59 = vld [vmem:[%s2185_s12 + $0x2c] sm:$0x1] }
  0x1c   : > { %1751 = vmatpush3.bf16.msra.mxu0 %v1985_v22  ;;  %v371_v9 = vsel %vm361_vm2, %v336_v57, 0.0  ;;  %v1663_v11 = vpack.c.bf16 %v333_v54, %v2044_v61  ;;  %1676 = vmatprep.mubr.msk.bf16.mxu1 %vm2247_vm6, %v1675_v6  ;;  %v413_v19 = vrot.slane %v370_v63, 1  ;;  %v264_v22 = vunpack.c.l.bf16 %v244_v14  ;;  %v2008_v57 = vld [vmem:[%s2598_s3 + $0x1d8] sm:$0xff]  }
  0x1d   : > { %1791 = vmatpush3.bf16.msra.mxu1 %v1986_v24  ;;  %1752 = vmatprep.subr.bf16.mxu0 %v1987_v25  ;;  %v2268_v10 = vsel %vm406_vm1, %v410_v0, %v411_v1  ;;  %v2281_v16 = vsel %vm443_vm5, %v447_v4, %v448_v5  ;;  %v414_v24 = vrot.slane %v371_v9, 1  ;;  %v2001_v25 = vld [vmem:[%s2598_s3 + $0x108] sm:$0xff]   ;;  %v266_v0 = vunpack.c.l.bf16 %v246_v50  ;;  %v2009_v5 = vld [vmem:[%s2598_s3 + $0x118] sm:$0xff]  }
  0x1e   : > { %1792 = vmatprep.subr.bf16.mxu1 %v1988_v26  ;;  %v439_v15 = vpack.c.bf16 %v2268_v10, %v2239_v62  ;;  %v476_v20 = vpack.c.bf16 %v2281_v16, %v2252_v3  ;;  %v291_v26 = vmul.f32 %v2203_v42, %v263_v18  ;;  %v267_v1 = vunpack.c.l.bf16 %v247_v51 }
  0x1f   : > { %v2320_v46 = vsel %vm406_vm1, %v413_v19, %v414_v24  ;;  %v268_v6 = vunpack.c.l.bf16 %v248_v59 }
  0x20   : > { %1753 = vmatpush3.bf16.msra.mxu0 %v1989_v27  ;;  %1123 = vmatprep.mubr.bf16.mxu0 %v439_v15  ;;  %v2002_v27 = vld [vmem:[%s2598_s3 + $0x188] sm:$0xff]   ;;  %v295_v15 = vmul.f32 %v2203_v42, %v267_v1 }
  0x21   : > { %1793 = vmatpush3.bf16.msra.mxu1 %v1990_v29  ;;  %1754 = vmatprep.subr.bf16.mxu0 %v1991_v30  ;;  %v292_v29 = vmul.f32 %v2203_v42, %v264_v22  ;;  %v293_v30 = vmul.f32 %v2203_v42, %v265_v23  ;;  %v296_v18 = vmul.f32 %v2203_v42, %v268_v6  ;;  %v2011_v22 = vld [vmem:[%s2598_s3 + $0x160] sm:$0xff]  }
  0x22   : > { %1794 = vmatprep.subr.bf16.mxu1 %v1992_v31  ;;  %v450_v31 = vrot.slane %v370_v63, 2  ;;  %v321_v23 = vadd.f32 %v2208_v43, %v295_v15  ;;  %v2021_v15 = vld [vmem:[%s2598_s3 + $0x130] sm:$0xff]  }
  0x23   : > { %v318_v36 = vadd.f32 %v2208_v43, %v292_v29  ;;  %v319_v37 = vadd.f32 %v2208_v43, %v293_v30  ;;  %v2014_v30 = vld [vmem:[%s2598_s3 + $0x1a0] sm:$0xff]  }
  0x24   : > { %1755 = vmatpush3.bf16.msra.mxu0 %v1993_v32  ;;  %v317_v32 = vadd.f32 %v2208_v43, %v291_v26  ;;  %v322_v26 = vadd.f32 %v2208_v43, %v296_v18 }
  0x25   : > { %1795 = vmatpush3.bf16.msra.mxu1 %v1994_v34  ;;  %1820 = vmatprep.subr.bf16.mxu0 %v1995_v48  ;;  %v451_v34 = vrot.slane %v371_v9, 2  ;;  %v338_v44 = vmax.f32 %v318_v36, 0.0  ;;  %v2317_v45 = vmax.f32 %v319_v37, 0.0  ;;  %v2015_v37 = vld [vmem:[%s2598_s3 + $0x168] sm:$0xff]  }
  0x26   : > { %1860 = vmatprep.subr.bf16.mxu1 %v1996_v49  ;;  %v337_v39 = vmax.f32 %v317_v32, 0.0  ;;  %v2007_v49 = vld [vmem:[%s2598_s3 + $0x158] sm:$0xff]   ;;  %v2016_v32 = vld [vmem:[%s2598_s3 + $0x1e8] sm:$0xff]  }
  0x27   : > { %1664 = vmatmul.mubr.msk.bf16.vlgmr.msra.gmra.mrb[0].mxu0 %vm2258_vm7, %v1663_v11  ;;  %v2325_v48 = vsel %vm443_vm5, %v450_v31, %v451_v34  ;;  %v373_v52 = vsel %vm361_vm2, %v338_v44, 0.0  ;;  %v374_v7 = vsel %vm354_vm0, %v2317_v45, 0.0  ;;  %v341_v31 = vmax.f32 %v321_v23, 0.0  ;;  %v2017_v44 = vld [vmem:[%s2598_s3 + $0x128] sm:$0xff]  }
  0x28   : > { %1189 = vmatmul.mubr.bf16.vlgmr.msra.gmra.mrb[0].mxu1 %v476_v20  ;;  %1821 = vmatpush3.bf16.msra.mxu0 %v1997_v8  ;;  %v372_v47 = vsel %vm354_vm0, %v337_v39, 0.0  ;;  %v1678_v54 = vpack.c.bf16 %v2317_v45, %v337_v39  ;;  %v417_v60 = vrot.slane %v373_v52, 1  ;;  %v454_v63 = vrot.slane %v373_v52, 2 }
  0x29   : > { %1861 = vmatpush3.bf16.msra.mxu1 %v1998_v12  ;;  %1822 = vmatprep.subr.bf16.mxu0 %v1999_v17  ;;  %v416_v53 = vrot.slane %v372_v47, 1  ;;  %v453_v55 = vrot.slane %v372_v47, 2  ;;  %v2342_v4 = vpack.c.bf16 %v337_v39, %v2225_v56  ;;  %v269_v8 = vunpack.c.h.bf16 %v247_v51  ;;  %v2010_v56 = vld [vmem:[%s2598_s3 + $0x198] sm:$0xff]   ;;  %v2012_v17 = vld [vmem:[%s2598_s3 + $0x1e0] sm:$0xff]   ;;  %v2018_v47 = vld [vmem:[%s2598_s3 + $0x1a8] sm:$0xff]  }
  0x2a   : > { %1862 = vmatprep.subr.bf16.mxu1 %v2000_v21  ;;  %1679 = vmatprep.mubr.msk.bf16.mxu1 %vm2247_vm6, %v1678_v54  ;;  %v294_v12 = vmul.f32 %v2203_v42, %v266_v0  ;;  %v419_v20 = vrot.slane %v374_v7, 1  ;;  %v456_v24 = vrot.slane %v374_v7, 2  ;;  %v342_v34 = vmax.f32 %v322_v26, 0.0  ;;  %v252_v54 = vld [vmem:[%s2185_s12 + $0x3c] sm:$0x1]  ;;  %v2019_v7 = vld [vmem:[%s2598_s3 + $0x170] sm:$0xff]  }
  0x2b   : > { %v2351_v9 = vsel %vm406_vm1, %v416_v53, %v417_v60  ;;  %v2354_v11 = vsel %vm443_vm5, %v453_v55, %v454_v63  ;;  %v297_v21 = vmul.f32 %v2203_v42, %v269_v8  ;;  %v376_v39 = vsel %vm354_vm0, %v341_v31, 0.0  ;;  %v2020_v55 = vld [vmem:[%s2598_s3 + $0x1f0] sm:$0xff]  }
  0x2c   : > { %1823 = vmatpush3.bf16.msra.mxu0 %v2001_v25  ;;  %v2362_v13 = vpack.c.bf16 %v2351_v9, %v2320_v46  ;;  %v2366_v14 = vpack.c.bf16 %v2354_v11, %v2325_v48  ;;  %v320_v19 = vadd.f32 %v2208_v43, %v294_v12  ;;  %v2013_v25 = vld [vmem:[%s2598_s3 + $0x120] sm:$0xff]   ;;  %v377_v50 = vsel %vm361_vm2, %v342_v34, 0.0 }
  0x2d   : > { %1863 = vmatpush3.bf16.msra.mxu1 %v2002_v27  ;;  %1824 = vmatprep.subr.bf16.mxu0 %v2003_v35  ;;  %v323_v29 = vadd.f32 %v2208_v43, %v297_v21  ;;  %v422_v51 = vrot.slane %v376_v39, 1  ;;  %v459_v53 = vrot.slane %v376_v39, 2  ;;  %v423_v59 = vrot.slane %v377_v50, 1 }
  0x2e   : > { %1864 = vmatprep.subr.bf16.mxu1 %v2004_v38  ;;  %1131 = vmatprep.mubr.bf16.mxu0 %v2362_v13  ;;  %v340_v27 = vmax.f32 %v320_v19, 0.0  ;;  %v250_v38 = vld [vmem:[%s2185_s12 + $0x34] sm:$0x1]  ;;  %v460_v63 = vrot.slane %v377_v50, 2  ;;  %v2428_v0 = vpack.c.bf16 %v341_v31, %v2317_v45  ;;  %v272_v6 = vunpack.c.l.bf16 %v252_v54 }
  0x2f   : > { %1667 = vmatmul.mubr.msk.bf16.gmra.mrb[4].mxu0 %vm2247_vm6, %v2342_v4  ;;  %v2397_v36 = vmax.f32 %v323_v29, 0.0  ;;  %v270_v1 = vunpack.c.l.bf16 %v250_v38  ;;  %v2434_v8 = vsel %vm406_vm1, %v422_v51, %v423_v59 }
  0x30   : > { %1825 = vmatpush3.bf16.msra.mxu0 %v2005_v40  ;;  %1197 = vmatmul.mubr.bf16.gmra.mrb[4].mxu1 %v2366_v14  ;;  %v375_v35 = vsel %vm361_vm2, %v340_v27, 0.0  ;;  %v300_v23 = vmul.f32 %v2203_v42, %v272_v6 }
  0x31   : > { %1865 = vmatpush3.bf16.msra.mxu1 %v2006_v41  ;;  %1826 = vmatprep.subr.bf16.mxu0 %v2007_v49  ;;  %v420_v40 = vrot.slane %v375_v35, 1  ;;  %v457_v41 = vrot.slane %v375_v35, 2  ;;  %v251_v49 = vld [vmem:[%s2185_s12 + $0x38] ss:$8 sps:$4 sm:$0xff]   ;;  %v1681_v52 = vpack.c.bf16 %v2397_v36, %v341_v31  ;;  %v378_v12 = vsel %vm354_vm0, %v2397_v36, 0.0 }
  0x32   : > { %1866 = vmatprep.subr.bf16.mxu1 %v2008_v57  ;;  %v273_v45 = vunpack.c.h.bf16 %v251_v49  ;;  %v326_v29 = vadd.f32 %v2208_v43, %v300_v23  ;;  %v2025_v35 = vld [vmem:[%s2598_s3 + $0x138] sm:$0xff]   ;;  %v2032_v23 = vld [vmem:[%s2598_s3 + $0x228] sm:$0xff]  }
  0x33   : > { %v2420_v57 = vsel %vm406_vm1, %v419_v20, %v420_v40  ;;  %v2423_v60 = vsel %vm443_vm5, %v456_v24, %v457_v41  ;;  %1682 = vmatprep.mubr.msk.bf16.mxu1 %vm2247_vm6, %v1681_v52  ;;  %v298_v20 = vmul.f32 %v2203_v42, %v270_v1 }
  0x34   : > { %1827 = vmatpush3.bf16.msra.mxu0 %v2009_v5  ;;  %v271_v5 = vunpack.c.l.bf16 %v251_v49  ;;  %v2450_v18 = vpack.c.bf16 %v2434_v8, %v2420_v57  ;;  %v301_v24 = vmul.f32 %v2203_v42, %v273_v45  ;;  %v346_v38 = vmax.f32 %v326_v29, 0.0 }
  0x35   : > { %1867 = vmatpush3.bf16.msra.mxu1 %v2010_v56  ;;  %1828 = vmatprep.subr.bf16.mxu0 %v2011_v22  ;;  %v2437_v56 = vsel %vm443_vm5, %v459_v53, %v460_v63  ;;  %v2023_v22 = vld [vmem:[%s2598_s3 + $0x178] sm:$0xff]   ;;  %v324_v26 = vadd.f32 %v2208_v43, %v298_v20 }
  0x36   : > { %1868 = vmatprep.subr.bf16.mxu1 %v2012_v17  ;;  %v2022_v17 = vld [vmem:[%s2598_s3 + $0x1b0] sm:$0xff]   ;;  %v2454_v19 = vpack.c.bf16 %v2437_v56, %v2423_v60  ;;  %v299_v21 = vmul.f32 %v2203_v42, %v271_v5  ;;  %1139 = vmatprep.mubr.bf16.mxu0 %v2450_v18  ;;  %v327_v31 = vadd.f32 %v2208_v43, %v301_v24  ;;  %v381_v49 = vsel %vm361_vm2, %v346_v38, 0.0 }
  0x37   : > { %1670 = vmatmul.mubr.msk.bf16.gmra.mrb[8].mxu0 %vm2247_vm6, %v2428_v0  ;;  %v429_v53 = vrot.slane %v381_v49, 1  ;;  %v466_v59 = vrot.slane %v381_v49, 2 }
  0x38   : > { %1829 = vmatpush3.bf16.msra.mxu0 %v2013_v25  ;;  %v2024_v25 = vld [vmem:[%s2598_s3 + $0x1f8] sm:$0xff]   ;;  %1205 = vmatmul.mubr.bf16.gmra.mrb[8].mxu1 %v2454_v19  ;;  %v325_v27 = vadd.f32 %v2208_v43, %v299_v21  ;;  %v2481_v39 = vmax.f32 %v327_v31, 0.0  ;;  %v490_v21 = vpack.c.bf16 %v2320_v46, %v2268_v10  ;;  %v491_v10 = vpack.c.bf16 %v2420_v57, %v2351_v9 }
  0x39   : > { %1869 = vmatpush3.bf16.msra.mxu1 %v2014_v30  ;;  %1830 = vmatprep.subr.bf16.mxu0 %v2015_v37  ;;  %v425_v30 = vrot.slane %v378_v12, 1  ;;  %v2026_v37 = vld [vmem:[%s2598_s3 + $0x1b8] sm:$0xff]  }
  0x3a   : > { %1870 = vmatprep.subr.bf16.mxu1 %v2016_v32  ;;  %v344_v32 = vmax.f32 %v324_v26, 0.0  ;;  %v345_v34 = vmax.f32 %v325_v27, 0.0  ;;  %v382_v46 = vsel %vm354_vm0, %v2481_v39, 0.0  ;;  %v1696_v26 = vpack.c.bf16 %v2044_v61, %v2481_v39 }
  0x3b   : > { %v494_v9 = vrot.slane %v382_v46, 2  ;;  %v486_v28 = vrot.slane %v382_v46, 1 }
  0x3c   : > { %1831 = vmatpush3.bf16.msra.mxu0 %v2017_v44  ;;  %v379_v40 = vsel %vm361_vm2, %v344_v32, 0.0  ;;  %v380_v41 = vsel %vm354_vm0, %v345_v34, 0.0  ;;  %v462_v44 = vrot.slane %v378_v12, 2  ;;  %v1684_v52 = vpack.c.bf16 %v2481_v39, %v345_v34 }
  0x3d   : > { %1871 = vmatpush3.bf16.msra.mxu1 %v2018_v47  ;;  %1832 = vmatprep.subr.bf16.mxu0 %v2019_v7  ;;  %v2027_v47 = vld [vmem:[%s2598_s3 + $0x200] sm:$0xff]   ;;  %v426_v50 = vrot.slane %v379_v40, 1  ;;  %v428_v51 = vrot.slane %v380_v41, 1  ;;  %v463_v54 = vrot.slane %v379_v40, 2  ;;  %v2499_v1 = vpack.c.bf16 %v345_v34, %v2397_v36 }
  0x3e   : > { %1872 = vmatprep.subr.bf16.mxu1 %v2020_v55  ;;  %v465_v55 = vrot.slane %v380_v41, 2  ;;  %1685 = vmatprep.mubr.msk.bf16.mxu1 %vm2247_vm6, %v1684_v52  ;;  %v498_v36 = vpack.c.bf16 %v2325_v48, %v2281_v16  ;;  %v2028_v16 = vld [vmem:[%s2598_s3 + $0x208] sm:$0xff]   ;;  %v499_v48 = vpack.c.bf16 %v2423_v60, %v2354_v11  ;;  %v2030_v11 = vld [vmem:[%s2598_s3 + $0x218] sm:$0xff]   ;;  %v2031_v60 = vld [vmem:[%s2598_s3 + $0x220] sm:$0xff]  }
  0x3f   : > { %v2494_v63 = vsel %vm406_vm1, %v425_v30, %v426_v50  ;;  %v2502_v5 = vsel %vm406_vm1, %v428_v51, %v429_v53  ;;  %v464_v6 = vsel %vm443_vm5, %v462_v44, %v463_v54 }
  0x40   : > { %1833 = vmatpush3.bf16.msra.mxu0 %v2021_v15  ;;  %v2506_v7 = vsel %vm443_vm5, %v465_v55, %v466_v59  ;;  %v442_v12 = vpack.c.bf16 %v2502_v5, %v2494_v63  ;;  %v254_v15 = vld [vmem:[%s2185_s12 + $0x44] sm:$0x1] }
  0x41   : > { %1873 = vmatpush3.bf16.msra.mxu1 %v2022_v17  ;;  %1834 = vmatprep.subr.bf16.mxu0 %v2023_v22  ;;  %v2511_v45 = vpack.c.bf16 %v2506_v7, %v464_v6  ;;  %v274_v17 = vunpack.c.l.bf16 %v254_v15 }
  0x42   : > { %1874 = vmatprep.subr.bf16.mxu1 %v2024_v25  ;;  %1147 = vmatprep.mubr.bf16.mxu0 %v442_v12 }
  0x43   : > { %1213 = vmatmul.mubr.bf16.gmra.mrb[12].mxu1 %v2511_v45  ;;  %1673 = vmatmul.mubr.msk.bf16.gmra.mrb[12].mxu0 %vm2247_vm6, %v2499_v1  ;;  %v302_v20 = vmul.f32 %v2203_v42, %v274_v17 }
  0x44   : > { %1835 = vmatpush3.bf16.msra.mxu0 %v2025_v35  ;;  %1318 = vmatprep.mubr.bf16.mxu1 %v2362_v13  ;;  %v500_v13 = vpack.c.bf16 %v464_v6, %v2437_v56 }
  0x45   : > { %1875 = vmatpush3.bf16.msra.mxu1 %v2026_v37  ;;  %1912 = vmatprep.subr.bf16.mxu0 %v2027_v47  ;;  %v328_v22 = vadd.f32 %v2208_v43, %v302_v20  ;;  %v2029_v43 = vld [vmem:[%s2598_s3 + $0x210] sm:$0xff]  }
  0x46   : > { %1936 = vmatprep.subr.bf16.mxu1 %v2027_v47  ;;  %1253 = vmatprep.mubr.bf16.mxu0 %v498_v36 }
  0x47   : > { %v348_v42 = vmax.f32 %v328_v22, 0.0 }
  0x4b   : > { %1688 = vmatmul.mubr.msk.bf16.vlgmr.msra.gmra.mrb[16].mxu1 %vm2247_vm6, %v2342_v4  ;;  %1254 = vmatmul.mubr.bf16.vlgmr.msra.gmra.mrb[16].mxu0 %v490_v21  ;;  %v383_v4 = vsel %vm361_vm2, %v348_v42, 0.0 }
  0x4c   : > { %1944 = vmatpush3.bf16.msra.mxu1 %v2027_v47  ;;  %1913 = vmatpush3.bf16.msra.mxu0 %v2027_v47  ;;  %v495_v57 = vrot.slane %v383_v4, 2  ;;  %v487_v33 = vrot.slane %v383_v4, 1 }
  0x4d   : > { %1937 = vmatprep.subr.bf16.mxu1 %v2028_v16  ;;  %1914 = vmatprep.subr.bf16.mxu0 %v2028_v16 }
  0x4e   : > { %1261 = vmatprep.mubr.bf16.mxu0 %v499_v48  ;;  %1326 = vmatprep.mubr.bf16.mxu1 %v2450_v18  ;;  %v496_v56 = vsel %vm443_vm5, %v494_v9, %v495_v57  ;;  %v488_v18 = vsel %vm406_vm1, %v486_v28, %v487_v33 }
  0x4f   : > { %v501_v24 = vpack.c.bf16 %v496_v56, %v2506_v7  ;;  %v509_v25 = vpack.c.bf16 %v2239_v62, %v488_v18  ;;  %v493_v2 = vpack.c.bf16 %v488_v18, %v2502_v5  ;;  %v2034_v62 = vld [vmem:[%s2598_s3 + $0x238] sm:$0xff]   ;;  %v514_v61 = vpack.c.bf16 %v2252_v3, %v496_v56 }
  0x50   : > { %1945 = vmatpush3.bf16.msra.mxu1 %v2028_v16  ;;  %1915 = vmatpush3.bf16.msra.mxu0 %v2028_v16 }
  0x51   : > { %1938 = vmatprep.subr.bf16.mxu1 %v2029_v43  ;;  %1916 = vmatprep.subr.bf16.mxu0 %v2029_v43 }
  0x53   : > { %1691 = vmatmul.mubr.msk.bf16.gmra.mrb[20].mxu1 %vm2247_vm6, %v2428_v0  ;;  %1262 = vmatmul.mubr.bf16.gmra.mrb[20].mxu0 %v491_v10  ;;  %v492_v0 = vpack.c.bf16 %v2494_v63, %v2434_v8  ;;  %v2033_v8 = vld [vmem:[%s2598_s3 + $0x230] sm:$0xff]  }
  0x54   : > { %1946 = vmatpush3.bf16.msra.mxu1 %v2029_v43  ;;  %1917 = vmatpush3.bf16.msra.mxu0 %v2029_v43 }
  0x55   : > { %1939 = vmatprep.subr.bf16.mxu1 %v2030_v11  ;;  %1918 = vmatprep.subr.bf16.mxu0 %v2030_v11 }
  0x56   : > { %1269 = vmatprep.mubr.bf16.mxu0 %v500_v13  ;;  %1334 = vmatprep.mubr.bf16.mxu1 %v442_v12 }
  0x58   : > { %1947 = vmatpush3.bf16.msra.mxu1 %v2030_v11  ;;  %1919 = vmatpush3.bf16.msra.mxu0 %v2030_v11 }
  0x59   : > { %1940 = vmatprep.subr.bf16.mxu1 %v2031_v60  ;;  %1920 = vmatprep.subr.bf16.mxu0 %v2031_v60 }
  0x5b   : > { %1694 = vmatmul.mubr.msk.bf16.gmra.mrb[24].mxu1 %vm2247_vm6, %v2499_v1  ;;  %1270 = vmatmul.mubr.bf16.gmra.mrb[24].mxu0 %v492_v0 }
  0x5c   : > { %1948 = vmatpush3.bf16.msra.mxu1 %v2031_v60  ;;  %1921 = vmatpush3.bf16.msra.mxu0 %v2031_v60 }
  0x5d   : > { %1941 = vmatprep.subr.bf16.mxu1 %v2032_v23  ;;  %1922 = vmatprep.subr.bf16.mxu0 %v2032_v23 }
  0x5e   : > { %1277 = vmatprep.mubr.bf16.mxu0 %v501_v24  ;;  %1342 = vmatprep.mubr.bf16.mxu1 %v509_v25 }
  0x60   : > { %1949 = vmatpush3.bf16.msra.mxu1 %v2032_v23  ;;  %1923 = vmatpush3.bf16.msra.mxu0 %v2032_v23 }
  0x61   : > { %1942 = vmatprep.subr.bf16.mxu1 %v2033_v8  ;;  %1924 = vmatprep.subr.bf16.mxu0 %v2033_v8 }
  0x63   : > { %1697 = vmatmul.mubr.msk.bf16.gmra.mrb[28].mxu1 %vm2230_vm4, %v1696_v26  ;;  %1278 = vmatmul.mubr.bf16.gmra.mrb[28].mxu0 %v493_v2 }
  0x64   : > { %1950 = vmatpush3.bf16.msra.mxu1 %v2033_v8  ;;  %1925 = vmatpush3.bf16.msra.mxu0 %v2033_v8 }
  0x65   : > { %1943 = vmatprep.subr.bf16.mxu1 %v2034_v62  ;;  %1926 = vmatprep.subr.bf16.mxu0 %v2034_v62 }
  0x66   : > { %1928 = vmatprep.mubr.bf16.mxu0 %v2366_v14  ;;  %1932 = vmatprep.mubr.bf16.mxu1 %v2511_v45 }
  0x68   : > { %1951 = vmatpush3.bf16.msra.mxu1 %v2034_v62  ;;  %1927 = vmatpush3.bf16.msra.mxu0 %v2034_v62 }
  0x6b   : > { %1933 = vmatmul.mubr.bf16.vlgmr.msra.gmra.mrb[32].mxu1 %v514_v61  ;;  %1929 = vmatmul.mubr.bf16.vlgmr.msra.gmra.mrb[32].mxu0 %v2454_v19 }
  0xfa   : > { %v1756_v27 = vpop.f32.mrb[0].mxu0 }
  0xfb   : > { %v1796_v29 = vpop.f32.mrb[0].mxu1  ;;  %v1757_v58 = vpop.f32.mrb[1].mxu0 }
  0xfc   : > { %v1797_v30 = vpop.f32.mrb[1].mxu1  ;;  %v1758_v31 = vadd.f32 %v1757_v58, %v1756_v27  ;;  %v1759_v34 = vpop.f32.mrb[2].mxu0 }
  0xfd   : > { %v1798_v32 = vadd.f32 %v1797_v30, %v1796_v29  ;;  %v1799_v35 = vpop.f32.mrb[2].mxu1  ;;  %v1760_v37 = vpop.f32.mrb[3].mxu0 }
  0xfe   : > { %v1800_v38 = vpop.f32.mrb[3].mxu1  ;;  %v1761_v39 = vadd.f32 %v1760_v37, %v1759_v34 }
  0xff   : > { %v1191_v14 = vadd.f32 %v1798_v32, %v1758_v31  ;;  %v1801_v3 = vadd.f32 %v1800_v38, %v1799_v35 }
 0x101   : > { %v1194_v40 = vadd.f32 %v1801_v3, %v1761_v39 }
 0x102   : > { %v1762_v44 = vpop.f32.mrb[4].mxu0 }
 0x103   : > { %v1802_v41 = vpop.f32.mrb[4].mxu1  ;;  %v1763_v49 = vpop.f32.mrb[5].mxu0 }
 0x104   : > { %v1803_v47 = vpop.f32.mrb[5].mxu1  ;;  %v1764_v51 = vadd.f32 %v1763_v49, %v1762_v44  ;;  %v1765_v52 = vpop.f32.mrb[6].mxu0 }
 0x105   : > { %v1804_v50 = vadd.f32 %v1803_v47, %v1802_v41  ;;  %v1805_v19 = vpop.f32.mrb[6].mxu1  ;;  %v1766_v54 = vpop.f32.mrb[7].mxu0 }
 0x106   : > { %v1806_v53 = vpop.f32.mrb[7].mxu1  ;;  %v1767_v63 = vadd.f32 %v1766_v54, %v1765_v52 }
 0x107   : > { %v1807_v55 = vadd.f32 %v1806_v53, %v1805_v19  ;;  %v1199_v59 = vadd.f32 %v1804_v50, %v1764_v51 }
 0x109   : > { %v1202_v1 = vadd.f32 %v1807_v55, %v1767_v63 }
 0x10a   : > { %v1768_v6 = vpop.f32.mrb[8].mxu0 }
 0x10b   : > { %v1808_v5 = vpop.f32.mrb[8].mxu1  ;;  %v1769_v12 = vpop.f32.mrb[9].mxu0 }
 0x10c   : > { %v1809_v7 = vpop.f32.mrb[9].mxu1  ;;  %v1770_v15 = vadd.f32 %v1769_v12, %v1768_v6  ;;  %v1771_v17 = vpop.f32.mrb[10].mxu0 }
 0x10d   : > { %v1810_v45 = vadd.f32 %v1809_v7, %v1808_v5  ;;  %v1811_v36 = vpop.f32.mrb[10].mxu1  ;;  %v1772_v21 = vpop.f32.mrb[11].mxu0 }
 0x10e   : > { %v1812_v20 = vpop.f32.mrb[11].mxu1  ;;  %v1773_v48 = vadd.f32 %v1772_v21, %v1771_v17 }
 0x10f   : > { %v1813_v22 = vadd.f32 %v1812_v20, %v1811_v36  ;;  %v1207_v16 = vadd.f32 %v1810_v45, %v1770_v15 }
 0x111   : > { %v1210_v42 = vadd.f32 %v1813_v22, %v1773_v48 }
 0x116   : > { %v1814_v43 = vpop.f32.mrb[12].mxu1  ;;  %v1774_v10 = vpop.f32.mrb[12].mxu0 }
 0x117   : > { %v1815_v46 = vpop.f32.mrb[13].mxu1  ;;  %v1775_v4 = vpop.f32.mrb[13].mxu0 }
 0x118   : > { %v1816_v11 = vadd.f32 %v1815_v46, %v1814_v43  ;;  %v1817_v13 = vpop.f32.mrb[14].mxu1  ;;  %v1776_v9 = vadd.f32 %v1775_v4, %v1774_v10  ;;  %v1777_v57 = vpop.f32.mrb[14].mxu0 }
 0x119   : > { %v1818_v28 = vpop.f32.mrb[15].mxu1  ;;  %v1778_v33 = vpop.f32.mrb[15].mxu0 }
 0x11a   : > { %v1819_v60 = vadd.f32 %v1818_v28, %v1817_v13  ;;  %v1215_v56 = vadd.f32 %v1816_v11, %v1776_v9  ;;  %v1779_v0 = vadd.f32 %v1778_v33, %v1777_v57 }
 0x11c   : > { %v1218_v18 = vadd.f32 %v1819_v60, %v1779_v0 }
 0x11e   : > { %v1876_v23 = vpop.f32.mrb[16].mxu1  ;;  %v1836_v24 = vpop.f32.mrb[16].mxu0 }
 0x11f   : > { %v1877_v25 = vpop.f32.mrb[17].mxu1  ;;  %v1837_v8 = vpop.f32.mrb[17].mxu0 }
 0x120   : > { %v1878_v26 = vadd.f32 %v1877_v25, %v1876_v23  ;;  %v1879_v2 = vpop.f32.mrb[18].mxu1  ;;  %v1838_v62 = vadd.f32 %v1837_v8, %v1836_v24  ;;  %v1839_v61 = vpop.f32.mrb[18].mxu0 }
 0x121   : > { %v1880_v27 = vpop.f32.mrb[19].mxu1  ;;  %v1840_v29 = vpop.f32.mrb[19].mxu0 }
 0x122   : > { %v1881_v58 = vadd.f32 %v1880_v27, %v1879_v2  ;;  %v1256_v30 = vadd.f32 %v1838_v62, %v1191_v14  ;;  %v1841_v31 = vadd.f32 %v1840_v29, %v1839_v61 }
 0x124   : > { %v1259_v32 = vadd.f32 %v1841_v31, %v1194_v40  ;;  %v1321_v34 = vadd.f32 %v1878_v26, %v1256_v30 }
 0x126   : > { %v1882_v35 = vpop.f32.mrb[20].mxu1  ;;  %v1842_v37 = vpop.f32.mrb[20].mxu0  ;;  %v2581_v39 = vadd.f32 %v1881_v58, %v1259_v32 }
 0x127   : > { %v1883_v38 = vpop.f32.mrb[21].mxu1  ;;  %v1843_v3 = vpop.f32.mrb[21].mxu0 }
 0x128   : > { %v1884_v41 = vadd.f32 %v1883_v38, %v1882_v35  ;;  %v1885_v44 = vpop.f32.mrb[22].mxu1  ;;  %v1844_v47 = vadd.f32 %v1843_v3, %v1842_v37  ;;  %v1845_v49 = vpop.f32.mrb[22].mxu0 }
 0x129   : > { %v1886_v50 = vpop.f32.mrb[23].mxu1  ;;  %v1846_v19 = vpop.f32.mrb[23].mxu0 }
 0x12a   : > { %v1887_v51 = vadd.f32 %v1886_v50, %v1885_v44  ;;  %v1264_v52 = vadd.f32 %v1844_v47, %v1199_v59  ;;  %v1847_v53 = vadd.f32 %v1846_v19, %v1845_v49 }
 0x12c   : > { %v1267_v54 = vadd.f32 %v1847_v53, %v1202_v1  ;;  %v1329_v14 = vadd.f32 %v1884_v41, %v1264_v52 }
 0x12e   : > { %v1888_v55 = vpop.f32.mrb[24].mxu1  ;;  %v1848_v40 = vpop.f32.mrb[24].mxu0  ;;  %v1332_v5 = vadd.f32 %v1887_v51, %v1267_v54 }
 0x12f   : > { %v1889_v63 = vpop.f32.mrb[25].mxu1  ;;  %v1849_v6 = vpop.f32.mrb[25].mxu0 }
 0x130   : > { %v1890_v7 = vadd.f32 %v1889_v63, %v1888_v55  ;;  %v1891_v12 = vpop.f32.mrb[26].mxu1  ;;  %v1850_v45 = vadd.f32 %v1849_v6, %v1848_v40  ;;  %v1851_v36 = vpop.f32.mrb[26].mxu0 }
 0x131   : > { %v1892_v15 = vpop.f32.mrb[27].mxu1  ;;  %v1852_v17 = vpop.f32.mrb[27].mxu0 }
 0x132   : > { %v1893_v20 = vadd.f32 %v1892_v15, %v1891_v12  ;;  %v1272_v21 = vadd.f32 %v1850_v45, %v1207_v16  ;;  %v1853_v22 = vadd.f32 %v1852_v17, %v1851_v36 }
 0x134   : > { %v1275_v48 = vadd.f32 %v1853_v22, %v1210_v42  ;;  %v1337_v43 = vadd.f32 %v1890_v7, %v1272_v21 }
 0x136   : > { %v1894_v59 = vpop.f32.mrb[28].mxu1  ;;  %v1854_v10 = vpop.f32.mrb[28].mxu0  ;;  %v1340_v46 = vadd.f32 %v1893_v20, %v1275_v48 }
 0x137   : > { %v1895_v1 = vpop.f32.mrb[29].mxu1  ;;  %v1855_v4 = vpop.f32.mrb[29].mxu0 }
 0x138   : > { %v1896_v11 = vadd.f32 %v1895_v1, %v1894_v59  ;;  %v1897_v13 = vpop.f32.mrb[30].mxu1  ;;  %v1856_v9 = vadd.f32 %v1855_v4, %v1854_v10  ;;  %v1857_v57 = vpop.f32.mrb[30].mxu0 }
 0x139   : > { %v1898_v28 = vpop.f32.mrb[31].mxu1  ;;  %v1858_v33 = vpop.f32.mrb[31].mxu0 }
 0x13a   : > { %v1899_v60 = vadd.f32 %v1898_v28, %v1897_v13  ;;  %v1280_v0 = vadd.f32 %v1856_v9, %v1215_v56  ;;  %v1859_v23 = vadd.f32 %v1858_v33, %v1857_v57 }
 0x13c   : > { %v1283_v24 = vadd.f32 %v1859_v23, %v1218_v18  ;;  %v1345_v16 = vadd.f32 %v1896_v11, %v1280_v0 }
 0x13e   : > { %v1934_v25 = vpop.f32.mrb[32].mxu1  ;;  %v1930_v42 = vpop.f32.mrb[32].mxu0  ;;  %v1348_v2 = vadd.f32 %v1899_v60, %v1283_v24 }
 0x13f   : > { %v1410_v8 = vadd.f32 %v1934_v25, %v1345_v16  ;;  %v1401_v26 = vpop.f32.mrb[33].mxu1  ;;  %v1394_v62 = vadd.f32 %v1930_v42, %v1329_v14  ;;  %v1385_v61 = vpop.f32.mrb[33].mxu0 }
 0x140   : > { %v1402_v27 = vadd.f32 %v1401_v26, %v1337_v43  ;;  %v1935_v29 = vpop.f32.mrb[34].mxu1  ;;  %v1386_v58 = vadd.f32 %v1385_v61, %v1321_v34  ;;  %v1931_v30 = vpop.f32.mrb[34].mxu0 }
 0x141   : > { %v1413_v31 = vadd.f32 %v1935_v29, %v1348_v2  ;;  %v1404_v32 = vpop.f32.mrb[35].mxu1  ;;  %v1397_v56 = vadd.f32 %v1931_v30, %v1332_v5  ;;  %v1388_v18 = vpop.f32.mrb[35].mxu0  ;;  %v1471_v50 = vmul.f32 %v1394_v62, %v1394_v62  ;;  %v1475_v6 = vmul.f32 %v1410_v8, %v1410_v8 }
 0x142   : > { %v1405_v35 = vadd.f32 %v1404_v32, %v1340_v46  ;;  %v1389_v38 = vadd.f32 %v1388_v18, %v2581_v39  ;;  %v1469_v44 = vmul.f32 %v1386_v58, %v1386_v58  ;;  %v1473_v14 = vmul.f32 %v1402_v27, %v1402_v27 }
 0x143   : > { %v1735_v37 = vpack.c.bf16 %v1413_v31, %v1410_v8  ;;  %v1725_v3 = vpack.c.bf16 %v1397_v56, %v1394_v62  ;;  %v1472_v52 = vmul.f32 %v1397_v56, %v1397_v56  ;;  %v1476_v45 = vmul.f32 %v1413_v31, %v1413_v31 }
 0x144   : > { %v1730_v41 = vpack.c.bf16 %v1405_v35, %v1402_v27  ;;  %v1720_v47 = vpack.c.bf16 %v1389_v38, %v1386_v58  ;;  %v1456_v49 = vadd.f32 %v1389_v38, %v1386_v58  ;;  %v1470_v34 = vmul.f32 %v1389_v38, %v1389_v38 }
 0x145   : > { %1739 = vst [vmem:[%s231_s15 + $0x18] sm:$0xff] %v1735_v37   ;;  %1737 = vst [vmem:[%s231_s15 + $0x8] sm:$0xff] %v1725_v3   ;;  %v1474_v63 = vmul.f32 %v1405_v35, %v1405_v35 }
 0x146   : > { %1738 = vst [vmem:[%s231_s15 + $0x10] sm:$0xff] %v1730_v41   ;;  %1721 = vst [vmem:[%s231_s15] sm:$0xff] %v1720_v47   ;;  %v1457_v19 = vadd.f32 %v1456_v49, %v1394_v62  ;;  %v1477_v51 = vadd.f32 %v1470_v34, %v1469_v44 }
 0x148   : > { %v1478_v53 = vadd.f32 %v1477_v51, %v1471_v50  ;;  %v1458_v54 = vadd.f32 %v1457_v19, %v1397_v56 }
 0x14a   : > { %v1459_v55 = vadd.f32 %v1458_v54, %v1402_v27  ;;  %v1479_v40 = vadd.f32 %v1478_v53, %v1472_v52 }
 0x14c   : > { %v1460_v39 = vadd.f32 %v1459_v55, %v1405_v35  ;;  %v1480_v5 = vadd.f32 %v1479_v40, %v1473_v14 }
 0x14e   : > { %v1461_v7 = vadd.f32 %v1460_v39, %v1410_v8  ;;  %v1481_v12 = vadd.f32 %v1480_v5, %v1474_v63 }
 0x150   : > { %v1462_v36 = vadd.f32 %v1461_v7, %v1413_v31  ;;  %v1482_v15 = vadd.f32 %v1481_v12, %v1475_v6 }
 0x152   : > { %v1463_v17 = vrot.slane %v1462_v36, 4  ;;  %v1483_v20 = vadd.f32 %v1482_v15, %v1476_v45 }
 0x154   : > { %v1464_v21 = vadd.f32 %v1463_v17, %v1462_v36  ;;  %v1484_v22 = vrot.slane %v1483_v20, 4 }
 0x156   : > { %v1465_v48 = vrot.slane %v1464_v21, 2  ;;  %v1485_v43 = vadd.f32 %v1484_v22, %v1483_v20 }
 0x158   : > { %v1466_v59 = vadd.f32 %v1465_v48, %v1464_v21  ;;  %v1486_v10 = vrot.slane %v1485_v43, 2 }
 0x15a   : > { %v1467_v1 = vrot.slane %v1466_v59, 1  ;;  %v1487_v46 = vadd.f32 %v1486_v10, %v1485_v43 }
 0x15c   : > { %v1488_v4 = vrot.slane %v1487_v46, 1  ;;  %v1468_v11 = vadd.f32 %v1467_v1, %v1466_v59 }
 0x15e   : > { %v1489_v13 = vadd.f32 %v1488_v4, %v1487_v46 }
 0x160   : > { %v1491_v9 = vsel %vm1490_vm8, %v1468_v11, %v1489_v13 }
 0x161   : > { %1492 = vst [vmem:[%s235_s21] sm:$0x3] %v1491_v9 }
 0x162 PF: > { %s16_s18 = sadd.s32 1, %s2041_s18  }
 0x163   : > { %p13_p4 = scmp.ge.s32.totalorder %s16_s18, 4  }
 0x165   :  { %15 = sbr.rel (!%p13_p4) target bundleno = 1 (0x1), region = 78 }

</bundles_post_ra>
